<compile_context>
chip_gen: v5e
topology: v5e:2x2
jax: 0.10.0
libtpu: 0.0.40
codegen_flags: <defaults>
</compile_context>

<pallas_src>
import jax
import jax.numpy as jnp
from jax import lax
from jax.experimental import pallas as pl
from jax.experimental.pallas import tpu as pltpu


def _round_up(a, b):
    return ((a + b - 1) // b) * b


def _plan_rows(n_rows, target_tile):
    """Pick (tile_n, padded_rows): large balanced tiles, >=2 steps for v7x TCs."""
    ALIGN = 8                                      # f32 sublane granularity
    n_al = _round_up(max(int(n_rows), 1), ALIGN)
    target = max(ALIGN, _round_up(int(target_tile), ALIGN))
    steps = max(1, -(-n_al // target))             # ceil div
    # v7x megacore: prefer >=2 (and even) balanced steps so the "parallel"
    # grid axis shards across both TensorCores, as long as each step still
    # gets a reasonable number of rows.
    if steps == 1 and n_al >= 256:
        steps = 2
    if steps > 1 and steps % 2:
        steps += 1
    tile = _round_up(-(-n_al // steps), ALIGN)
    return tile, steps * tile


def node_network_kernel(msg_ref, feat_ref, glob_ref,
                        w0m_ref, w0f_ref, w0g_ref, b0_ref,
                        w1_ref, b1_ref, w2_ref, b2_ref,
                        out_ref):
    # Layer 0.  The mailbox sum over the M messages is folded into the first
    # matmul: msg_ref holds the (tile_n, M*D_in) flattened messages, and
    # w0m_ref holds W0's message row-block tiled M times, so
    #   sum_m(msg_m) @ W0_msg == msg_flat @ tile(W0_msg, M).
    # f32 operands, f32 MXU accumulation (kernel is HBM-bound; MXU has slack).
    h = jnp.dot(msg_ref[...], w0m_ref[...], preferred_element_type=jnp.float32)
    h = h + jnp.dot(feat_ref[...], w0f_ref[...],
                    preferred_element_type=jnp.float32)
    h = h + jnp.dot(glob_ref[...], w0g_ref[...],
                    preferred_element_type=jnp.float32)
    h = jnp.maximum(h + b0_ref[...], 0.0)

    # Hidden layer.
    h = jnp.dot(h, w1_ref[...], preferred_element_type=jnp.float32) + b1_ref[...]
    h = jnp.maximum(h, 0.0)

    # Output layer.
    o = jnp.dot(h, w2_ref[...], preferred_element_type=jnp.float32) + b2_ref[...]

    # Row-wise L2 normalization (exact, matches the reference): o / (||o|| + 1e-8).
    norm = jnp.sqrt(jnp.sum(o * o, axis=1, keepdims=True))
    out_ref[...] = (o / (norm + 1e-8)).astype(out_ref.dtype)


def prepare_params(params, num_messages):
    """One-time weight preparation (do NOT redo per forward call).

    Splits W0 into its [message_sum | features | global_features] row blocks,
    folds the mailbox sum into the message block by tiling it M times, and
    reshapes biases to (1, H) rows.  All tensors stay f32 (tiny, VMEM-resident).
    """
    (w0, b0), (w1, b1), (w2, b2) = params
    d_in = w0.shape[0] // 3
    f32 = lambda a: jnp.asarray(a, jnp.float32)
    row = lambda b: jnp.asarray(b, jnp.float32).reshape(1, -1)
    w0_msg = jnp.tile(f32(w0[:d_in]), (num_messages, 1))     # (M*D_in, H0)
    w0_feat = f32(w0[d_in:2 * d_in])                          # (D_in, H0)
    w0_glob = f32(w0[2 * d_in:])                              # (D_in, H0)
    return (w0_msg, w0_feat, w0_glob, row(b0),
            f32(w1), row(b1), f32(w2), row(b2))


def node_network(messages, features, global_features, prepared_params, *,
                 tile_n=4096, out_dtype=None):
    """Pallas forward for NodeNetwork.

    messages:         (N, M, D_in)
    features:         (N, D_in)
    global_features:  (N, D_in)
    prepared_params:  output of prepare_params()
    """
    N, M, D_in = messages.shape
    (w0m, w0f, w0g, b0, w1, b1, w2, b2) = prepared_params
    D_out = w2.shape[1]
    out_dtype = features.dtype if out_dtype is None else out_dtype

    # Row-major reshape (N, M, D_in) -> (N, M*D_in) is contiguous and free;
    # no concat / cast materialization pass over the inputs.
    msg_flat = messages.reshape(N, M * D_in)

    tile_n, n_pad = _plan_rows(N, tile_n)
    if n_pad != N:
        pad = ((0, n_pad - N), (0, 0))
        msg_flat = jnp.pad(msg_flat, pad)          # zero rows: bias-only outputs,
        features = jnp.pad(features, pad)          # finite, sliced off below
        global_features = jnp.pad(global_features, pad)

    grid = (n_pad // tile_n,)

    def row_spec(cols):
        return pl.BlockSpec((tile_n, cols), lambda i: (i, 0))

    def const_spec(arr):
        return pl.BlockSpec(arr.shape, lambda i: (0, 0))

    out = pl.pallas_call(
        node_network_kernel,
        out_shape=jax.ShapeDtypeStruct((n_pad, D_out), out_dtype),
        grid=grid,
        in_specs=[
            row_spec(M * D_in),                    # flattened messages
            row_spec(D_in),                        # features
            row_spec(D_in),                        # global features
            const_spec(w0m), const_spec(w0f), const_spec(w0g), const_spec(b0),
            const_spec(w1), const_spec(b1),
            const_spec(w2), const_spec(b2),
        ],
        out_specs=pl.BlockSpec((tile_n, D_out), lambda i: (i, 0)),
        compiler_params=pltpu.CompilerParams(
            dimension_semantics=("parallel",),
            vmem_limit_bytes=48 * 1024 * 1024),
    )(msg_flat, features, global_features,
      w0m, w0f, w0g, b0, w1, b1, w2, b2)

    return out[:N]


def init_params(key, inputsize, outputsize, layers):
    """Deterministic synthetic params matching build_layers(3*inputsize, outputsize, layers)."""
    dims = [3 * inputsize] + list(layers) + [outputsize]
    keys = jax.random.split(key, len(dims) - 1)
    params = []
    for k, din, dout in zip(keys, dims[:-1], dims[1:]):
        kw, kb = jax.random.split(k)
        bound = 1.0 / jnp.sqrt(jnp.float32(din))
        w = jax.random.uniform(kw, (din, dout), jnp.float32, -bound, bound)
        b = jax.random.uniform(kb, (1, dout), jnp.float32, -bound, bound)
        params.append((w, b))
    return params


def reference(messages, features, global_features, params):
    """Pure-JAX f32 reference of the PyTorch forward."""
    (w0, b0), (w1, b1), (w2, b2) = params
    hp = lax.Precision.HIGHEST
    x = jnp.concatenate(
        [jnp.sum(messages, axis=1), features, global_features], axis=1)
    h = jnp.maximum(jnp.dot(x, w0, precision=hp) + b0, 0.0)
    h = jnp.maximum(jnp.dot(h, w1, precision=hp) + b1, 0.0)
    o = jnp.dot(h, w2, precision=hp) + b2
    norm = jnp.sqrt(jnp.sum(o * o, axis=1, keepdims=True))
    return o / (norm + 1e-8)


if __name__ == "__main__":
    # Small shapes implied by the forward: N nodes, M messages per node,
    # inputsize=8, hidden layers [32, 32], outputsize=8.  N=300 exercises the
    # multi-step grid (2 balanced tiles) and the padded-tail path.
    N, M = 300, 4
    inputsize, outputsize, hidden_layers = 8, 8, [32, 32]

    key = jax.random.PRNGKey(0)
    k_msg, k_feat, k_gfeat, k_par = jax.random.split(key, 4)

    messages = jax.random.normal(k_msg, (N, M, inputsize), jnp.float32)
    features = jax.random.normal(k_feat, (N, inputsize), jnp.float32)
    global_features = jax.random.normal(k_gfeat, (N, inputsize), jnp.float32)
    params = init_params(k_par, inputsize, outputsize, hidden_layers)
    prepared = prepare_params(params, M)     # fold / split weights once

    out = node_network(messages, features, global_features, prepared)
    out = jax.block_until_ready(out)

    ref = reference(messages, features, global_features, params)
    assert out.shape == (N, outputsize)
    # Fully f32 pipeline (f32 MXU accumulation) vs f32 reference.
    assert jnp.allclose(out, ref, atol=3e-3, rtol=3e-3), "mismatch vs JAX reference"

    print("KERNEL_OK")
</pallas_src>

<mosaic_0001>
module attributes {stable_mosaic.version = 11 : i64} {
  func.func @node_network_kernel(%arg0: i32, %arg1: memref<152x32xf32, #tpu.memory_space<vmem>>, %arg2: memref<152x8xf32, #tpu.memory_space<vmem>>, %arg3: memref<152x8xf32, #tpu.memory_space<vmem>>, %arg4: memref<32x32xf32, #tpu.memory_space<vmem>>, %arg5: memref<8x32xf32, #tpu.memory_space<vmem>>, %arg6: memref<8x32xf32, #tpu.memory_space<vmem>>, %arg7: memref<1x32xf32, #tpu.memory_space<vmem>>, %arg8: memref<32x32xf32, #tpu.memory_space<vmem>>, %arg9: memref<1x32xf32, #tpu.memory_space<vmem>>, %arg10: memref<32x8xf32, #tpu.memory_space<vmem>>, %arg11: memref<1x8xf32, #tpu.memory_space<vmem>>, %arg12: memref<152x8xf32, #tpu.memory_space<vmem>>) attributes {dimension_semantics = [#tpu.dimension_semantics<parallel>], iteration_bounds = array<i64: 2>, scalar_prefetch = 0 : i64, scratch_operands = 0 : i64, tpu.core_type = #tpu.core_type<tc>, window_params = [{transform_indices = @transform_0, window_bounds = array<i64: 152, 32>}, {transform_indices = @transform_1, window_bounds = array<i64: 152, 8>}, {transform_indices = @transform_2, window_bounds = array<i64: 152, 8>}, {pipeline_mode = #tpu.pipeline_mode<synchronous>, transform_indices = @transform_3, window_bounds = array<i64: 32, 32>}, {pipeline_mode = #tpu.pipeline_mode<synchronous>, transform_indices = @transform_4, window_bounds = array<i64: 8, 32>}, {pipeline_mode = #tpu.pipeline_mode<synchronous>, transform_indices = @transform_5, window_bounds = array<i64: 8, 32>}, {pipeline_mode = #tpu.pipeline_mode<synchronous>, transform_indices = @transform_6, window_bounds = array<i64: 1, 32>}, {pipeline_mode = #tpu.pipeline_mode<synchronous>, transform_indices = @transform_7, window_bounds = array<i64: 32, 32>}, {pipeline_mode = #tpu.pipeline_mode<synchronous>, transform_indices = @transform_8, window_bounds = array<i64: 1, 32>}, {pipeline_mode = #tpu.pipeline_mode<synchronous>, transform_indices = @transform_9, window_bounds = array<i64: 32, 8>}, {pipeline_mode = #tpu.pipeline_mode<synchronous>, transform_indices = @transform_10, window_bounds = array<i64: 1, 8>}, {transform_indices = @transform_11, window_bounds = array<i64: 152, 8>}]} {
    %c0 = arith.constant 0 : index
    %c0_0 = arith.constant 0 : index
    %0 = vector.load %arg1[%c0, %c0_0] : memref<152x32xf32, #tpu.memory_space<vmem>>, vector<152x32xf32>
    %c0_1 = arith.constant 0 : index
    %c0_2 = arith.constant 0 : index
    %1 = vector.load %arg4[%c0_1, %c0_2] : memref<32x32xf32, #tpu.memory_space<vmem>>, vector<32x32xf32>
    %cst = arith.constant dense<0.000000e+00> : vector<152x32xf32>
    %2 = tpu.matmul %0, %1, %cst {dimension_numbers = #tpu.dot_dimension_numbers<[1], [0], [0], [1], [0, 0, 1, 1], [], []>} : vector<152x32xf32>, vector<32x32xf32>, vector<152x32xf32> -> vector<152x32xf32>
    %c0_3 = arith.constant 0 : index
    %c0_4 = arith.constant 0 : index
    %3 = vector.load %arg2[%c0_3, %c0_4] : memref<152x8xf32, #tpu.memory_space<vmem>>, vector<152x8xf32>
    %c0_5 = arith.constant 0 : index
    %c0_6 = arith.constant 0 : index
    %4 = vector.load %arg5[%c0_5, %c0_6] : memref<8x32xf32, #tpu.memory_space<vmem>>, vector<8x32xf32>
    %cst_7 = arith.constant dense<0.000000e+00> : vector<152x32xf32>
    %5 = tpu.matmul %3, %4, %cst_7 {dimension_numbers = #tpu.dot_dimension_numbers<[1], [0], [0], [1], [0, 0, 1, 1], [], []>} : vector<152x8xf32>, vector<8x32xf32>, vector<152x32xf32> -> vector<152x32xf32>
    %6 = arith.addf %2, %5 : vector<152x32xf32>
    %c0_8 = arith.constant 0 : index
    %c0_9 = arith.constant 0 : index
    %7 = vector.load %arg3[%c0_8, %c0_9] : memref<152x8xf32, #tpu.memory_space<vmem>>, vector<152x8xf32>
    %c0_10 = arith.constant 0 : index
    %c0_11 = arith.constant 0 : index
    %8 = vector.load %arg6[%c0_10, %c0_11] : memref<8x32xf32, #tpu.memory_space<vmem>>, vector<8x32xf32>
    %cst_12 = arith.constant dense<0.000000e+00> : vector<152x32xf32>
    %9 = tpu.matmul %7, %8, %cst_12 {dimension_numbers = #tpu.dot_dimension_numbers<[1], [0], [0], [1], [0, 0, 1, 1], [], []>} : vector<152x8xf32>, vector<8x32xf32>, vector<152x32xf32> -> vector<152x32xf32>
    %10 = arith.addf %6, %9 : vector<152x32xf32>
    %c0_13 = arith.constant 0 : index
    %c0_14 = arith.constant 0 : index
    %11 = vector.load %arg7[%c0_13, %c0_14] : memref<1x32xf32, #tpu.memory_space<vmem>>, vector<1x32xf32>
    %12 = vector.broadcast %11 : vector<1x32xf32> to vector<152x32xf32>
    %13 = arith.addf %10, %12 : vector<152x32xf32>
    %cst_15 = arith.constant 0.000000e+00 : f32
    %14 = vector.broadcast %cst_15 : f32 to vector<152x32xf32>
    %15 = arith.maximumf %13, %14 : vector<152x32xf32>
    %c0_16 = arith.constant 0 : index
    %c0_17 = arith.constant 0 : index
    %16 = vector.load %arg8[%c0_16, %c0_17] : memref<32x32xf32, #tpu.memory_space<vmem>>, vector<32x32xf32>
    %cst_18 = arith.constant dense<0.000000e+00> : vector<152x32xf32>
    %17 = tpu.matmul %15, %16, %cst_18 {dimension_numbers = #tpu.dot_dimension_numbers<[1], [0], [0], [1], [0, 0, 1, 1], [], []>} : vector<152x32xf32>, vector<32x32xf32>, vector<152x32xf32> -> vector<152x32xf32>
    %c0_19 = arith.constant 0 : index
    %c0_20 = arith.constant 0 : index
    %18 = vector.load %arg9[%c0_19, %c0_20] : memref<1x32xf32, #tpu.memory_space<vmem>>, vector<1x32xf32>
    %19 = vector.broadcast %18 : vector<1x32xf32> to vector<152x32xf32>
    %20 = arith.addf %17, %19 : vector<152x32xf32>
    %cst_21 = arith.constant 0.000000e+00 : f32
    %21 = vector.broadcast %cst_21 : f32 to vector<152x32xf32>
    %22 = arith.maximumf %20, %21 : vector<152x32xf32>
    %c0_22 = arith.constant 0 : index
    %c0_23 = arith.constant 0 : index
    %23 = vector.load %arg10[%c0_22, %c0_23] : memref<32x8xf32, #tpu.memory_space<vmem>>, vector<32x8xf32>
    %cst_24 = arith.constant dense<0.000000e+00> : vector<152x8xf32>
    %24 = tpu.matmul %22, %23, %cst_24 {dimension_numbers = #tpu.dot_dimension_numbers<[1], [0], [0], [1], [0, 0, 1, 1], [], []>} : vector<152x32xf32>, vector<32x8xf32>, vector<152x8xf32> -> vector<152x8xf32>
    %c0_25 = arith.constant 0 : index
    %c0_26 = arith.constant 0 : index
    %25 = vector.load %arg11[%c0_25, %c0_26] : memref<1x8xf32, #tpu.memory_space<vmem>>, vector<1x8xf32>
    %26 = vector.broadcast %25 : vector<1x8xf32> to vector<152x8xf32>
    %27 = arith.addf %24, %26 : vector<152x8xf32>
    %28 = arith.mulf %27, %27 : vector<152x8xf32>
    %cst_27 = arith.constant dense<0.000000e+00> : vector<152xf32>
    %29 = vector.multi_reduction <add>, %28, %cst_27 [1] : vector<152x8xf32> to vector<152xf32>
    %30 = vector.shape_cast %29 : vector<152xf32> to vector<152x1xf32>
    %31 = math.sqrt %30 : vector<152x1xf32>
    %cst_28 = arith.constant 9.99999993E-9 : f32
    %32 = vector.broadcast %cst_28 : f32 to vector<152x1xf32>
    %33 = arith.addf %31, %32 : vector<152x1xf32>
    %34 = vector.broadcast %33 : vector<152x1xf32> to vector<152x8xf32>
    %35 = arith.divf %27, %34 : vector<152x8xf32>
    %c0_29 = arith.constant 0 : index
    %c0_30 = arith.constant 0 : index
    %36 = vector.load %arg12[%c0_29, %c0_30] : memref<152x8xf32, #tpu.memory_space<vmem>>, vector<152x8xf32>
    tpu.vector_store %arg12[%c0_29, %c0_30], %35 {strides = array<i32>} : memref<152x8xf32, #tpu.memory_space<vmem>>, vector<152x8xf32>,
    return
  }
  func.func @transform_0(%arg0: i32) -> (i32, i32) {
    %c0_i32 = arith.constant 0 : i32
    %c0_i32_0 = arith.constant 0 : i32
    return %arg0, %c0_i32 : i32, i32
  }
  func.func @transform_1(%arg0: i32) -> (i32, i32) {
    %c0_i32 = arith.constant 0 : i32
    %c0_i32_0 = arith.constant 0 : i32
    return %arg0, %c0_i32 : i32, i32
  }
  func.func @transform_2(%arg0: i32) -> (i32, i32) {
    %c0_i32 = arith.constant 0 : i32
    %c0_i32_0 = arith.constant 0 : i32
    return %arg0, %c0_i32 : i32, i32
  }
  func.func @transform_3(%arg0: i32) -> (i32, i32) {
    %c0_i32 = arith.constant 0 : i32
    %c0_i32_0 = arith.constant 0 : i32
    %c0_i32_1 = arith.constant 0 : i32
    return %c0_i32, %c0_i32_0 : i32, i32
  }
  func.func @transform_4(%arg0: i32) -> (i32, i32) {
    %c0_i32 = arith.constant 0 : i32
    %c0_i32_0 = arith.constant 0 : i32
    %c0_i32_1 = arith.constant 0 : i32
    return %c0_i32, %c0_i32_0 : i32, i32
  }
  func.func @transform_5(%arg0: i32) -> (i32, i32) {
    %c0_i32 = arith.constant 0 : i32
    %c0_i32_0 = arith.constant 0 : i32
    %c0_i32_1 = arith.constant 0 : i32
    return %c0_i32, %c0_i32_0 : i32, i32
  }
  func.func @transform_6(%arg0: i32) -> (i32, i32) {
    %c0_i32 = arith.constant 0 : i32
    %c0_i32_0 = arith.constant 0 : i32
    %c0_i32_1 = arith.constant 0 : i32
    return %c0_i32, %c0_i32_0 : i32, i32
  }
  func.func @transform_7(%arg0: i32) -> (i32, i32) {
    %c0_i32 = arith.constant 0 : i32
    %c0_i32_0 = arith.constant 0 : i32
    %c0_i32_1 = arith.constant 0 : i32
    return %c0_i32, %c0_i32_0 : i32, i32
  }
  func.func @transform_8(%arg0: i32) -> (i32, i32) {
    %c0_i32 = arith.constant 0 : i32
    %c0_i32_0 = arith.constant 0 : i32
    %c0_i32_1 = arith.constant 0 : i32
    return %c0_i32, %c0_i32_0 : i32, i32
  }
  func.func @transform_9(%arg0: i32) -> (i32, i32) {
    %c0_i32 = arith.constant 0 : i32
    %c0_i32_0 = arith.constant 0 : i32
    %c0_i32_1 = arith.constant 0 : i32
    return %c0_i32, %c0_i32_0 : i32, i32
  }
  func.func @transform_10(%arg0: i32) -> (i32, i32) {
    %c0_i32 = arith.constant 0 : i32
    %c0_i32_0 = arith.constant 0 : i32
    %c0_i32_1 = arith.constant 0 : i32
    return %c0_i32, %c0_i32_0 : i32, i32
  }
  func.func @transform_11(%arg0: i32) -> (i32, i32) {
    %c0_i32 = arith.constant 0 : i32
    %c0_i32_0 = arith.constant 0 : i32
    return %arg0, %c0_i32 : i32, i32
  }
}

</mosaic_0001>

<bundles_post_ra>
// kernel: tpu_custom_call.1
= control target key start
LH: loop header
LB: loop body
LE: loop exit
PB: predicated region body
PF: predicated region fallthrough
CT: control target
= control target key end

     0   :  { %s2225_s17 = smov 0   ;;  %s2975_s0 = inlined_call_operand.vmem [shape: f32[304,32], index: 0, kind: input, shape index: {}]   ;;  %s2976_s1 = inlined_call_operand.vmem [shape: f32[304,8], index: 1, kind: input, shape index: {}]   ;;  %s2977_s2 = inlined_call_operand.vmem [shape: f32[304,8], index: 2, kind: input, shape index: {}]   ;;  %s2978_s3 = inlined_call_operand.vmem [shape: f32[32,32], index: 3, kind: input, shape index: {}]   ;;  %s2979_s4 = inlined_call_operand.vmem [shape: f32[8,32], index: 4, kind: input, shape index: {}]   ;;  %s2980_s5 = inlined_call_operand.vmem [shape: f32[8,32], index: 5, kind: input, shape index: {}]   ;;  %s2981_s6 = inlined_call_operand.vmem [shape: f32[1,32], index: 6, kind: input, shape index: {}]   ;;  %s2982_s7 = inlined_call_operand.vmem [shape: f32[32,32], index: 7, kind: input, shape index: {}]   ;;  %s2983_s8 = inlined_call_operand.vmem [shape: f32[1,32], index: 8, kind: input, shape index: {}]   ;;  %s2984_s9 = inlined_call_operand.vmem [shape: f32[32,8], index: 9, kind: input, shape index: {}]   ;;  %s2985_s10 = inlined_call_operand.vmem [shape: f32[1,8], index: 10, kind: input, shape index: {}]   ;;  %s2986_s11 = inlined_call_operand.vmem [shape: f32[304,8], index: 11, kind: output, shape index: {}]  }
   0x1 LB: > { %s1957_s18 = sadd.s32 4294967295, %s2163_s17   ;;  %p1961_p0 = scmp.ge.s32.totalorder %s2163_s17, 1  ;;  %s2163_s17 = sphi %s2225_s17, %s21_s17  }
   0x2   : > { %p360_p1 = scmp.lt.s32.totalorder %s2163_s17, 3 }
   0x4   : > { %p361_p2 = pnand %p1961_p0, %p360_p1 }
   0x5   : > { %s410_s23 = smul.u32 (!%p361_p2), 19, %s1957_s18 }
   0x6   : > { %364 = sbr.rel (%p361_p2) target bundleno = 857 (0x359), region = 64 }
   0x7   : > { %p411_p3 = scmp.lt.s32.totalorder (!%p361_p2), %s410_s23, 37 }
   0xb   : > { %v456_v0 = vld [vmem:[%s2978_s3 + $0x18] sm:$0xff]  ;;  %v455_v1 = vld [vmem:[%s2978_s3 + $0x10] sm:$0xff]  ;;  %v476_v2 = vld [vmem:[%s2979_s4] sm:$0xff]  ;;  %s2988_s23 = smov (!%p411_p3, %s410_s23), 37  ;;  %vm477_vm0 = vcmask 64512   ;;  %vm609_vm1 = vcmask 261120  }
   0xc   : > { %679 = vmatpush.msra.mxu1 %v456_v0  ;;  %v760_v3 = vld [vmem:[%s2980_s5] sm:$0xff]  ;;  %v454_v4 = vld [vmem:[%s2978_s3 + $0x8] sm:$0xff]  ;;  %550 = vmatpush.msra.mxu0 %v476_v2  ;;  %s2251_s13 = sshll.u32 %s2988_s23, 3 }
   0xd   : > { %2063 = vmatpush.msra.mxu2 %v476_v2  ;;  %v453_v5 = vld [vmem:[%s2978_s3] sm:$0xff]  ;;  %2064 = vmatpush.msra.mxu3 %v476_v2  ;;  %s2257_s16 = scalar_lea.vmem %s2976_s1, %s2251_s13  ;;  %s2265_s20 = scalar_lea.vmem %s2975_s0, %s2251_s13 }
   0xe   : > { %680 = vmatpush.msra.mxu1 %v455_v1  ;;  %v457_v6 = vld [vmem:[%s2257_s16] sm:$0xff]  ;;  %v462_v7 = vld [vmem:[%s2257_s16 + $0x28] sm:$0xff]  ;;  %v463_v10 = vld [vmem:[%s2257_s16 + $0x30] sm:$0xff]  ;;  %s2327_s23 = scalar_lea.vmem %s2977_s2, %s2251_s13  ;;  %s2688_s12 = scalar_lea.vmem %s2986_s11, %s2251_s13 }
   0xf   : > { %2069 = vmatpush.msrb.mxu2 %v760_v3  ;;  %2065 = vmatpush.msrb.mxu3 %v456_v0  ;;  %v434_v8 = vld [vmem:[%s2265_s20] sm:$0xff]  ;;  %v458_v9 = vld [vmem:[%s2257_s16 + $0x8] sm:$0xff]  ;;  %v459_v12 = vld [vmem:[%s2257_s16 + $0x10] sm:$0xff] }
  0x10   : > { %681 = vmatpush.msra.mxu1 %v454_v4  ;;  %1966 = vmatmul.msk.f32.vlgmr.msra.gmra.mxu0 %vm477_vm0, %v457_v6  ;;  %v435_v11 = vld [vmem:[%s2265_s20 + $0x8] sm:$0xff]  ;;  %v464_v13 = vld [vmem:[%s2257_s16 + $0x38] sm:$0xff]  ;;  %v436_v14 = vld [vmem:[%s2265_s20 + $0x10] sm:$0xff] }
  0x11   : > { %2066 = vmatpush.msrb.mxu3 %v455_v1  ;;  %1971 = vmatmul.msk.f32.vlgmr.msra.gmra.mxu2 %vm477_vm0, %v462_v7  ;;  %v460_v15 = vld [vmem:[%s2257_s16 + $0x18] sm:$0xff]  ;;  %v465_v16 = vld [vmem:[%s2257_s16 + $0x40] sm:$0xff]  ;;  %v466_v19 = vld [vmem:[%s2257_s16 + $0x48] sm:$0xff] }
  0x12   : > { %682 = vmatpush.msra.mxu1 %v453_v5  ;;  %v437_v17 = vld [vmem:[%s2265_s20 + $0x18] sm:$0xff]  ;;  %v461_v18 = vld [vmem:[%s2257_s16 + $0x20] sm:$0xff]  ;;  %v467_v21 = vld [vmem:[%s2257_s16 + $0x50] sm:$0xff] }
  0x13   : > { %1985 = vmatmul.msk.f32.vlgmr.msra.gmra.mxu1 %vm609_vm1, %v434_v8  ;;  %2067 = vmatpush.msrb.mxu3 %v454_v4  ;;  %v438_v20 = vld [vmem:[%s2265_s20 + $0x20] sm:$0xff]  ;;  %v439_v22 = vld [vmem:[%s2265_s20 + $0x28] sm:$0xff]  ;;  %v468_v23 = vld [vmem:[%s2257_s16 + $0x58] sm:$0xff] }
  0x14   : > { %833 = vmatpush.msrb.mxu1 %v760_v3  ;;  %v440_v24 = vld [vmem:[%s2265_s20 + $0x30] sm:$0xff]  ;;  %v469_v25 = vld [vmem:[%s2257_s16 + $0x60] sm:$0xff]  ;;  %v441_v26 = vld [vmem:[%s2265_s20 + $0x38] sm:$0xff] }
  0x15   : > { %2068 = vmatpush.msrb.mxu3 %v453_v5  ;;  %v470_v27 = vld [vmem:[%s2257_s16 + $0x68] sm:$0xff]  ;;  %v442_v28 = vld [vmem:[%s2265_s20 + $0x40] sm:$0xff]  ;;  %v471_v29 = vld [vmem:[%s2257_s16 + $0x70] sm:$0xff] }
  0x16   : > { %v443_v30 = vld [vmem:[%s2265_s20 + $0x48] sm:$0xff]  ;;  %v472_v31 = vld [vmem:[%s2257_s16 + $0x78] sm:$0xff]  ;;  %v444_v32 = vld [vmem:[%s2265_s20 + $0x50] sm:$0xff] }
  0x17   : > { %v473_v33 = vld [vmem:[%s2257_s16 + $0x80] sm:$0xff]  ;;  %v445_v34 = vld [vmem:[%s2265_s20 + $0x58] sm:$0xff]  ;;  %v447_v38 = vld [vmem:[%s2265_s20 + $0x68] sm:$0xff] }
  0x18   : > { %1967 = vmatmul.msk.f32.gmra.mxu0 %vm477_vm0, %v458_v9  ;;  %v748_v35 = vld [vmem:[%s2327_s23 + $0x38] sm:$0xff]  ;;  %v446_v36 = vld [vmem:[%s2265_s20 + $0x60] sm:$0xff]  ;;  %v750_v39 = vld [vmem:[%s2327_s23 + $0x48] sm:$0xff] }
  0x19   : > { %1972 = vmatmul.msk.f32.gmra.mxu2 %vm477_vm0, %v463_v10  ;;  %v749_v37 = vld [vmem:[%s2327_s23 + $0x40] sm:$0xff]  ;;  %v448_v40 = vld [vmem:[%s2265_s20 + $0x70] sm:$0xff]  ;;  %v449_v42 = vld [vmem:[%s2265_s20 + $0x78] sm:$0xff] }
  0x1a   : > { %v751_v41 = vld [vmem:[%s2327_s23 + $0x50] sm:$0xff]  ;;  %v752_v43 = vld [vmem:[%s2327_s23 + $0x58] sm:$0xff]  ;;  %v450_v45 = vld [vmem:[%s2265_s20 + $0x80] sm:$0xff] }
  0x1b   : > { %1986 = vmatmul.msk.f32.gmra.mxu1 %vm609_vm1, %v435_v11  ;;  %v753_v46 = vld [vmem:[%s2327_s23 + $0x60] sm:$0xff]  ;;  %v754_v49 = vld [vmem:[%s2327_s23 + $0x68] sm:$0xff]  ;;  %v755_v53 = vld [vmem:[%s2327_s23 + $0x70] sm:$0xff] }
  0x1c   : > { %v741_v48 = vld [vmem:[%s2327_s23] sm:$0xff]  ;;  %v742_v51 = vld [vmem:[%s2327_s23 + $0x8] sm:$0xff]  ;;  %v743_v55 = vld [vmem:[%s2327_s23 + $0x10] sm:$0xff] }
  0x1d   : > { %v756_v57 = vld [vmem:[%s2327_s23 + $0x78] sm:$0xff]  ;;  %v757_v61 = vld [vmem:[%s2327_s23 + $0x80] sm:$0xff]  ;;  %v746_v3 = vld [vmem:[%s2327_s23 + $0x28] sm:$0xff] }
  0x1e   : > { %v744_v59 = vld [vmem:[%s2327_s23 + $0x18] sm:$0xff]  ;;  %v745_v63 = vld [vmem:[%s2327_s23 + $0x20] sm:$0xff]  ;;  %v747_v6 = vld [vmem:[%s2327_s23 + $0x30] sm:$0xff] }
  0x1f   : > { %v474_v9 = vld [vmem:[%s2257_s16 + $0x88] sm:$0xff] }
  0x20   : > { %1968 = vmatmul.msk.f32.gmra.mxu0 %vm477_vm0, %v459_v12  ;;  %1983 = vmatmul.msk.f32.vlgmr.msra.gmra.mxu3 %vm477_vm0, %v474_v9 }
  0x21   : > { %1973 = vmatmul.msk.f32.gmra.mxu2 %vm477_vm0, %v464_v13  ;;  %v475_v13 = vld [vmem:[%s2257_s16 + $0x90] sm:$0xff] }
  0x23   : > { %1987 = vmatmul.msk.f32.gmra.mxu1 %vm609_vm1, %v436_v14 }
  0x28   : > { %1969 = vmatmul.msk.f32.gmra.mxu0 %vm477_vm0, %v460_v15  ;;  %1984 = vmatmul.msk.f32.gmra.mxu3 %vm477_vm0, %v475_v13 }
  0x29   : > { %1974 = vmatmul.msk.f32.gmra.mxu2 %vm477_vm0, %v465_v16 }
  0x2b   : > { %1988 = vmatmul.msk.f32.gmra.mxu1 %vm609_vm1, %v437_v17  ;;  %v451_v17 = vld [vmem:[%s2265_s20 + $0x88] sm:$0xff] }
  0x30   : > { %1970 = vmatmul.msk.f32.gmra.mxu0 %vm477_vm0, %v461_v18  ;;  %2002 = vmatmul.msk.f32.vlgmr.msrb.gmra.mxu3 %vm609_vm1, %v451_v17 }
  0x31   : > { %1975 = vmatmul.msk.f32.gmra.mxu2 %vm477_vm0, %v466_v19  ;;  %v758_v19 = vld [vmem:[%s2327_s23 + $0x88] sm:$0xff] }
  0x33   : > { %1989 = vmatmul.msk.f32.gmra.mxu1 %vm609_vm1, %v438_v20 }
  0x39   : > { %1976 = vmatmul.msk.f32.gmra.mxu2 %vm477_vm0, %v467_v21  ;;  %v452_v21 = vld [vmem:[%s2265_s20 + $0x90] sm:$0xff] }
  0x3a   : > { %2003 = vmatmul.msk.f32.gmra.mxu3 %vm609_vm1, %v452_v21 }
  0x3b   : > { %1990 = vmatmul.msk.f32.gmra.mxu1 %vm609_vm1, %v439_v22 }
  0x41   : > { %1977 = vmatmul.msk.f32.gmra.mxu2 %vm477_vm0, %v468_v23 }
  0x43   : > { %1991 = vmatmul.msk.f32.gmra.mxu1 %vm609_vm1, %v440_v24  ;;  %v759_v24 = vld [vmem:[%s2327_s23 + $0x90] sm:$0xff] }
  0x49   : > { %1978 = vmatmul.msk.f32.gmra.mxu2 %vm477_vm0, %v469_v25 }
  0x4b   : > { %1992 = vmatmul.msk.f32.gmra.mxu1 %vm609_vm1, %v441_v26 }
  0x51   : > { %1979 = vmatmul.msk.f32.gmra.mxu2 %vm477_vm0, %v470_v27 }
  0x53   : > { %1993 = vmatmul.msk.f32.gmra.mxu1 %vm609_vm1, %v442_v28 }
  0x59   : > { %1980 = vmatmul.msk.f32.gmra.mxu2 %vm477_vm0, %v471_v29  ;;  %v956_v29 = vld [vmem:[%s2982_s7 + $0x18] sm:$0xff] }
  0x5a   : > { %1030 = vmatpush.msra.mxu3 %v956_v29 }
  0x5b   : > { %1994 = vmatmul.msk.f32.gmra.mxu1 %vm609_vm1, %v443_v30  ;;  %v955_v30 = vld [vmem:[%s2982_s7 + $0x10] sm:$0xff] }
  0x5c   : > { %1031 = vmatpush.msra.mxu3 %v955_v30 }
  0x61   : > { %1981 = vmatmul.msk.f32.gmra.mxu2 %vm477_vm0, %v472_v31 }
  0x63   : > { %1995 = vmatmul.msk.f32.gmra.mxu1 %vm609_vm1, %v444_v32 }
  0x69   : > { %1982 = vmatmul.msk.f32.gmra.mxu2 %vm477_vm0, %v473_v33  ;;  %v954_v33 = vld [vmem:[%s2982_s7 + $0x8] sm:$0xff] }
  0x6a   : > { %1032 = vmatpush.msra.mxu3 %v954_v33 }
  0x6b   : > { %1996 = vmatmul.msk.f32.gmra.mxu1 %vm609_vm1, %v445_v34 }
  0x71   : > { %2011 = vmatmul.msk.f32.vlgmr.msrb.gmra.mxu2 %vm477_vm0, %v748_v35  ;;  %v953_v35 = vld [vmem:[%s2982_s7] sm:$0xff] }
  0x72   : > { %1033 = vmatpush.msra.mxu3 %v953_v35 }
  0x73   : > { %1997 = vmatmul.msk.f32.gmra.mxu1 %vm609_vm1, %v446_v36 }
  0x79   : > { %2012 = vmatmul.msk.f32.gmra.mxu2 %vm477_vm0, %v749_v37 }
  0x7b   : > { %1998 = vmatmul.msk.f32.gmra.mxu1 %vm609_vm1, %v447_v38 }
  0x81   : > { %2013 = vmatmul.msk.f32.gmra.mxu2 %vm477_vm0, %v750_v39 }
  0x83   : > { %1999 = vmatmul.msk.f32.gmra.mxu1 %vm609_vm1, %v448_v40 }
  0x89   : > { %2014 = vmatmul.msk.f32.gmra.mxu2 %vm477_vm0, %v751_v41 }
  0x8b   : > { %2000 = vmatmul.msk.f32.gmra.mxu1 %vm609_vm1, %v449_v42 }
  0x8d   : > { %v552_v41 = vpop.f32.mrf.mxu0 }
  0x90   : > { %v2346_v44 = vpop.f32.mrf.mxu1 }
  0x91   : > { %2015 = vmatmul.msk.f32.gmra.mxu2 %vm477_vm0, %v752_v43 }
  0x93   : > { %2001 = vmatmul.msk.f32.gmra.mxu1 %vm609_vm1, %v450_v45 }
  0x94   : > { %v567_v52 = vpop.f32.mrf.mxu2 }
  0x98   : > { %v2352_v47 = vpop.f32.mrf.mxu1 }
  0x99   : > { %2016 = vmatmul.msk.f32.gmra.mxu2 %vm477_vm0, %v753_v46  ;;  %v555_v46 = vpop.f32.mrf.mxu0 }
  0x9b   : > { %2004 = vmatmul.msk.f32.vlgmr.msrb.gmra.mxu1 %vm477_vm0, %v741_v48  ;;  %v685_v48 = vadd.f32 %v2346_v44, %v552_v41 }
  0x9c   : > { %v570_v56 = vpop.f32.mrf.mxu2 }
  0xa0   : > { %v2358_v50 = vpop.f32.mrf.mxu1 }
  0xa1   : > { %2017 = vmatmul.msk.f32.gmra.mxu2 %vm477_vm0, %v754_v49 }
  0xa3   : > { %2005 = vmatmul.msk.f32.gmra.mxu1 %vm477_vm0, %v742_v51  ;;  %v2435_v51 = vld [vmem:[%s2981_s6] ss:$0 sm:$0xff] }
  0xa4   : > { %v573_v60 = vpop.f32.mrf.mxu2 }
  0xa8   : > { %v2364_v54 = vpop.f32.mrf.mxu1 }
  0xa9   : > { %2018 = vmatmul.msk.f32.gmra.mxu2 %vm477_vm0, %v755_v53 }
  0xab   : > { %2006 = vmatmul.msk.f32.gmra.mxu1 %vm477_vm0, %v743_v55 }
  0xac   : > { %v576_v1 = vpop.f32.mrf.mxu2 }
  0xb0   : > { %v2370_v58 = vpop.f32.mrf.mxu1 }
  0xb1   : > { %2019 = vmatmul.msk.f32.gmra.mxu2 %vm477_vm0, %v756_v57  ;;  %v558_v57 = vpop.f32.mrf.mxu0 }
  0xb3   : > { %2007 = vmatmul.msk.f32.gmra.mxu1 %vm477_vm0, %v744_v59 }
  0xb4   : > { %v579_v8 = vpop.f32.mrf.mxu2 }
  0xb8   : > { %v699_v62 = vpop.f32.mrf.mxu1 }
  0xb9   : > { %v2377_v0 = vadd.f32 %v699_v62, %v567_v52  ;;  %2020 = vmatmul.msk.f32.gmra.mxu2 %vm477_vm0, %v757_v61  ;;  %v691_v62 = vadd.f32 %v2358_v50, %v558_v57 }
  0xbb   : > { %2008 = vmatmul.msk.f32.gmra.mxu1 %vm477_vm0, %v745_v63 }
  0xbc   : > { %v582_v12 = vpop.f32.mrf.mxu2 }
  0xc0   : > { %v702_v2 = vpop.f32.mrf.mxu1 }
  0xc1   : > { %v2382_v4 = vadd.f32 %v702_v2, %v570_v56  ;;  %2021 = vmatmul.msk.f32.gmra.mxu2 %vm477_vm0, %v758_v19  ;;  %v688_v56 = vadd.f32 %v2352_v47, %v555_v46  ;;  %v561_v2 = vpop.f32.mrf.mxu0 }
  0xc2   : > { %v694_v47 = vadd.f32 %v2364_v54, %v561_v2 }
  0xc3   : > { %2009 = vmatmul.msk.f32.gmra.mxu1 %vm477_vm0, %v746_v3 }
  0xc4   : > { %v585_v16 = vpop.f32.mrf.mxu2 }
  0xc8   : > { %v705_v5 = vpop.f32.mrf.mxu1 }
  0xc9   : > { %v2386_v7 = vadd.f32 %v705_v5, %v573_v60  ;;  %2022 = vmatmul.msk.f32.gmra.mxu2 %vm477_vm0, %v759_v24 }
  0xcb   : > { %2010 = vmatmul.msk.f32.gmra.mxu1 %vm477_vm0, %v747_v6 }
  0xcc   : > { %v588_v22 = vpop.f32.mrf.mxu2 }
  0xd0   : > { %v708_v10 = vpop.f32.mrf.mxu1 }
  0xd1   : > { %v2391_v11 = vadd.f32 %v708_v10, %v576_v1  ;;  %v564_v10 = vpop.f32.mrf.mxu0 }
  0xd2   : > { %v697_v50 = vadd.f32 %v2370_v58, %v564_v10 }
  0xd4   : > { %v591_v28 = vpop.f32.mrf.mxu2 }
  0xd8   : > { %v711_v14 = vpop.f32.mrf.mxu1 }
  0xd9   : > { %v2395_v15 = vadd.f32 %v711_v14, %v579_v8 }
  0xdc   : > { %v594_v34 = vpop.f32.mrf.mxu2 }
  0xe0   : > { %v714_v18 = vpop.f32.mrf.mxu1 }
  0xe1   : > { %v2400_v20 = vadd.f32 %v714_v18, %v582_v12 }
  0xe4   : > { %v597_v38 = vpop.f32.mrf.mxu2 }
  0xe8   : > { %v717_v23 = vpop.f32.mrf.mxu1 }
  0xe9   : > { %v2406_v25 = vadd.f32 %v717_v23, %v585_v16 }
  0xec   : > { %v600_v42 = vpop.f32.mrf.mxu2 }
  0xf0   : > { %v720_v26 = vpop.f32.mrf.mxu1 }
  0xf1   : > { %v2409_v27 = vadd.f32 %v720_v26, %v588_v22 }
  0xf4   : > { %v856_v13 = vpop.f32.mrf.mxu2 }
  0xf5   : > { %v899_v29 = vadd.f32 %v856_v13, %v2386_v7  ;;  %v1114_v7 = vld [vmem:[%s2984_s9 + $0x18] sm:$0xff] }
  0xf6   : > { %1188 = vmatpush.msrb.mxu0 %v1114_v7 }
  0xf8   : > { %v723_v31 = vpop.f32.mrf.mxu1 }
  0xf9   : > { %v2417_v32 = vadd.f32 %v723_v31, %v591_v28  ;;  %v922_v31 = vadd.f32 %v2435_v51, %v899_v29 }
  0xfc   : > { %v859_v54 = vpop.f32.mrf.mxu2 }
 0x100   : > { %v726_v36 = vpop.f32.mrf.mxu1 }
 0x101   : > { %v2425_v37 = vadd.f32 %v726_v36, %v594_v34  ;;  %v900_v34 = vadd.f32 %v859_v54, %v2391_v11 }
 0x103   : > { %v923_v35 = vadd.f32 %v2435_v51, %v900_v34 }
 0x104   : > { %v862_v26 = vpop.f32.mrf.mxu2 }
 0x105   : > { %v942_v36 = vmax.f32 %v923_v35, 0.0 }
 0x108   : > { %v729_v39 = vpop.f32.mrf.mxu1 }
 0x109   : > { %v2427_v40 = vadd.f32 %v729_v39, %v597_v38 }
 0x10c   : > { %v865_v33 = vpop.f32.mrf.mxu2 }
 0x10d   : > { %v902_v11 = vadd.f32 %v865_v33, %v2400_v20 }
 0x110   : > { %v732_v43 = vpop.f32.mrf.mxu1 }
 0x111   : > { %v2429_v45 = vadd.f32 %v732_v43, %v600_v42  ;;  %v1113_v42 = vld [vmem:[%s2984_s9 + $0x10] sm:$0xff]  ;;  %v925_v43 = vadd.f32 %v2435_v51, %v902_v11 }
 0x112   : > { %1189 = vmatpush.msrb.mxu0 %v1113_v42 }
 0x113   : > { %v944_v46 = vmax.f32 %v925_v43, 0.0 }
 0x114   : > { %v868_v38 = vpop.f32.mrf.mxu2 }
 0x118   : > { %v835_v49 = vpop.f32.mrf.mxu1 }
 0x119   : > { %v892_v52 = vadd.f32 %v835_v49, %v685_v48  ;;  %v903_v48 = vadd.f32 %v868_v38, %v2406_v25  ;;  %v1112_v49 = vld [vmem:[%s2984_s9 + $0x8] sm:$0xff] }
 0x11a   : > { %1190 = vmatpush.msrb.mxu0 %v1112_v49 }
 0x11b   : > { %v915_v53 = vadd.f32 %v2435_v51, %v892_v52  ;;  %v926_v20 = vadd.f32 %v2435_v51, %v903_v48 }
 0x11d   : > { %v934_v55 = vmax.f32 %v915_v53, 0.0  ;;  %v945_v53 = vmax.f32 %v926_v20, 0.0 }
 0x11f   : > { %2023 = vmatmul.msk.f32.vlgmr.msra.gmra.mxu3 %vm609_vm1, %v934_v55 }
 0x120   : > { %v838_v59 = vpop.f32.mrf.mxu1 }
 0x121   : > { %v893_v60 = vadd.f32 %v838_v59, %v688_v56  ;;  %v1111_v56 = vld [vmem:[%s2984_s9] sm:$0xff]  ;;  %v603_v59 = vpop.f32.mrf.mxu3 }
 0x122   : > { %1191 = vmatpush.msrb.mxu0 %v1111_v56 }
 0x123   : > { %v916_v61 = vadd.f32 %v2435_v51, %v893_v60 }
 0x125   : > { %v935_v44 = vmax.f32 %v916_v61, 0.0 }
 0x127   : > { %2024 = vmatmul.msk.f32.gmra.mxu3 %vm609_vm1, %v935_v44 }
 0x128   : > { %v841_v63 = vpop.f32.mrf.mxu1 }
 0x129   : > { %v894_v1 = vadd.f32 %v841_v63, %v691_v62 }
 0x12b   : > { %v917_v3 = vadd.f32 %v2435_v51, %v894_v1  ;;  %v606_v1 = vpop.f32.mrf.mxu3 }
 0x12d   : > { %v936_v5 = vmax.f32 %v917_v3, 0.0 }
 0x12f   : > { %2025 = vmatmul.msk.f32.gmra.mxu3 %vm609_vm1, %v936_v5 }
 0x130   : > { %v844_v6 = vpop.f32.mrf.mxu1 }
 0x131   : > { %v895_v8 = vadd.f32 %v844_v6, %v694_v47 }
 0x133   : > { %v918_v9 = vadd.f32 %v2435_v51, %v895_v8 }
 0x135   : > { %v937_v12 = vmax.f32 %v918_v9, 0.0 }
 0x137   : > { %2026 = vmatmul.msk.f32.gmra.mxu3 %vm609_vm1, %v937_v12 }
 0x138   : > { %v847_v14 = vpop.f32.mrf.mxu1 }
 0x139   : > { %v896_v16 = vadd.f32 %v847_v14, %v697_v50 }
 0x13b   : > { %v919_v17 = vadd.f32 %v2435_v51, %v896_v16 }
 0x13d   : > { %v938_v18 = vmax.f32 %v919_v17, 0.0 }
 0x13f   : > { %2027 = vmatmul.msk.f32.gmra.mxu3 %vm609_vm1, %v938_v18 }
 0x140   : > { %v850_v19 = vpop.f32.mrf.mxu1 }
 0x141   : > { %v897_v21 = vadd.f32 %v850_v19, %v2377_v0  ;;  %v941_v0 = vmax.f32 %v922_v31, 0.0 }
 0x143   : > { %v920_v22 = vadd.f32 %v2435_v51, %v897_v21 }
 0x145   : > { %v939_v23 = vmax.f32 %v920_v22, 0.0 }
 0x147   : > { %2028 = vmatmul.msk.f32.gmra.mxu3 %vm609_vm1, %v939_v23 }
 0x148   : > { %v853_v24 = vpop.f32.mrf.mxu1 }
 0x149   : > { %v898_v58 = vadd.f32 %v853_v24, %v2382_v4  ;;  %v901_v4 = vadd.f32 %v862_v26, %v2395_v15  ;;  %v871_v15 = vpop.f32.mrf.mxu2 }
 0x14a   : > { %v904_v55 = vadd.f32 %v871_v15, %v2409_v27 }
 0x14b   : > { %v921_v28 = vadd.f32 %v2435_v51, %v898_v58  ;;  %v924_v39 = vadd.f32 %v2435_v51, %v901_v4 }
 0x14c   : > { %v927_v25 = vadd.f32 %v2435_v51, %v904_v55 }
 0x14d   : > { %v940_v30 = vmax.f32 %v921_v28, 0.0  ;;  %v943_v41 = vmax.f32 %v924_v39, 0.0 }
 0x14e   : > { %v946_v60 = vmax.f32 %v927_v25, 0.0 }
 0x14f   : > { %2029 = vmatmul.msk.f32.gmra.mxu3 %vm609_vm1, %v940_v30 }
 0x151   : > { %v874_v52 = vpop.f32.mrf.mxu2 }
 0x152   : > { %v905_v61 = vadd.f32 %v874_v52, %v2417_v32  ;;  %v735_v32 = vpop.f32.mrf.mxu3 }
 0x153   : > { %v736_v12 = vadd.f32 %v735_v32, %v603_v59 }
 0x154   : > { %v928_v44 = vadd.f32 %v2435_v51, %v905_v61 }
 0x156   : > { %v947_v62 = vmax.f32 %v928_v44, 0.0 }
 0x157   : > { %2030 = vmatmul.msk.f32.gmra.mxu3 %vm609_vm1, %v941_v0 }
 0x159   : > { %v877_v57 = vpop.f32.mrf.mxu2 }
 0x15a   : > { %v906_v27 = vadd.f32 %v877_v57, %v2425_v37  ;;  %v738_v13 = vpop.f32.mrf.mxu3 }
 0x15b   : > { %v739_v17 = vadd.f32 %v738_v13, %v606_v1 }
 0x15c   : > { %v929_v2 = vadd.f32 %v2435_v51, %v906_v27 }
 0x15e   : > { %v948_v3 = vmax.f32 %v929_v2, 0.0 }
 0x15f   : > { %2031 = vmatmul.msk.f32.gmra.mxu3 %vm609_vm1, %v942_v36 }
 0x161   : > { %v880_v63 = vpop.f32.mrf.mxu2 }
 0x162   : > { %v907_v5 = vadd.f32 %v880_v63, %v2427_v40  ;;  %v2502_v40 = vld [vmem:[%s2983_s8] ss:$0 sm:$0xff] }
 0x164   : > { %v930_v6 = vadd.f32 %v2435_v51, %v907_v5 }
 0x166   : > { %v949_v8 = vmax.f32 %v930_v6, 0.0 }
 0x167   : > { %2032 = vmatmul.msk.f32.gmra.mxu3 %vm609_vm1, %v943_v41 }
 0x169   : > { %v883_v47 = vpop.f32.mrf.mxu2 }
 0x16a   : > { %v908_v9 = vadd.f32 %v883_v47, %v2429_v45 }
 0x16c   : > { %v931_v10 = vadd.f32 %v2435_v51, %v908_v9 }
 0x16e   : > { %v950_v50 = vmax.f32 %v931_v10, 0.0 }
 0x16f   : > { %2033 = vmatmul.msk.f32.gmra.mxu3 %vm609_vm1, %v944_v46 }
 0x171   : > { %v886_v37 = vpop.f32.mrf.mxu2 }
 0x172   : > { %v909_v14 = vadd.f32 %v886_v37, %v736_v12 }
 0x174   : > { %v932_v16 = vadd.f32 %v2435_v51, %v909_v14 }
 0x176   : > { %v951_v19 = vmax.f32 %v932_v16, 0.0 }
 0x177   : > { %2034 = vmatmul.msk.f32.gmra.mxu3 %vm609_vm1, %v945_v53 }
 0x179   : > { %v889_v45 = vpop.f32.mrf.mxu2 }
 0x17a   : > { %v910_v21 = vadd.f32 %v889_v45, %v739_v17 }
 0x17c   : > { %v933_v23 = vadd.f32 %v2435_v51, %v910_v21 }
 0x17e   : > { %v952_v26 = vmax.f32 %v933_v23, 0.0 }
 0x17f   : > { %2035 = vmatmul.msk.f32.gmra.mxu3 %vm609_vm1, %v946_v60 }
 0x187   : > { %2036 = vmatmul.msk.f32.gmra.mxu3 %vm609_vm1, %v947_v62 }
 0x18f   : > { %2037 = vmatmul.msk.f32.gmra.mxu3 %vm609_vm1, %v948_v3 }
 0x197   : > { %2038 = vmatmul.msk.f32.gmra.mxu3 %vm609_vm1, %v949_v8  ;;  %v2543_v8 = vld [vmem:[%s2985_s10] ss:$0 sm:$0xff] }
 0x19f   : > { %2039 = vmatmul.msk.f32.gmra.mxu3 %vm609_vm1, %v950_v50 }
 0x1a2   : > { %v1035_v18 = vpop.f32.mrf.mxu3 }
 0x1a3   : > { %v1036_v54 = vadd.f32 %v2502_v40, %v1035_v18 }
 0x1a5   : > { %v1092_v22 = vmax.f32 %v1036_v54, 0.0 }
 0x1a7   : > { %2040 = vmatmul.msk.f32.gmra.mxu3 %vm609_vm1, %v951_v19  ;;  %2042 = vmatmul.msk.f32.vlgmr.msrb.gmra.mxu0 %vm609_vm1, %v1092_v22 }
 0x1aa   : > { %v1038_v24 = vpop.f32.mrf.mxu3 }
 0x1ab   : > { %v1039_v58 = vadd.f32 %v2502_v40, %v1038_v24 }
 0x1ad   : > { %v1093_v28 = vmax.f32 %v1039_v58, 0.0 }
 0x1af   : > { %2041 = vmatmul.msk.f32.gmra.mxu3 %vm609_vm1, %v952_v26  ;;  %2043 = vmatmul.msk.f32.gmra.mxu0 %vm609_vm1, %v1093_v28 }
 0x1b2   : > { %v1041_v29 = vpop.f32.mrf.mxu3 }
 0x1b3   : > { %v1042_v30 = vadd.f32 %v2502_v40, %v1041_v29 }
 0x1b5   : > { %v1094_v31 = vmax.f32 %v1042_v30, 0.0 }
 0x1b7   : > { %2044 = vmatmul.msk.f32.gmra.mxu0 %vm609_vm1, %v1094_v31 }
 0x1ba   : > { %v1044_v33 = vpop.f32.mrf.mxu3 }
 0x1bb   : > { %v1045_v0 = vadd.f32 %v2502_v40, %v1044_v33 }
 0x1bd   : > { %v1095_v34 = vmax.f32 %v1045_v0, 0.0 }
 0x1bf   : > { %2045 = vmatmul.msk.f32.gmra.mxu0 %vm609_vm1, %v1095_v34 }
 0x1c2   : > { %v1047_v51 = vpop.f32.mrf.mxu3 }
 0x1c3   : > { %v1048_v35 = vadd.f32 %v2502_v40, %v1047_v51 }
 0x1c5   : > { %v1096_v36 = vmax.f32 %v1048_v35, 0.0 }
 0x1c7   : > { %2046 = vmatmul.msk.f32.gmra.mxu0 %vm609_vm1, %v1096_v36 }
 0x1ca   : > { %v1050_v4 = vpop.f32.mrf.mxu3 }
 0x1cb   : > { %v1051_v38 = vadd.f32 %v2502_v40, %v1050_v4 }
 0x1cd   : > { %v1097_v7 = vmax.f32 %v1051_v38, 0.0 }
 0x1cf   : > { %2047 = vmatmul.msk.f32.gmra.mxu0 %vm609_vm1, %v1097_v7 }
 0x1d2   : > { %v1053_v39 = vpop.f32.mrf.mxu3 }
 0x1d3   : > { %v1054_v41 = vadd.f32 %v2502_v40, %v1053_v39 }
 0x1d5   : > { %v1098_v11 = vmax.f32 %v1054_v41, 0.0 }
 0x1d7   : > { %2048 = vmatmul.msk.f32.gmra.mxu0 %vm609_vm1, %v1098_v11 }
 0x1da   : > { %v1056_v42 = vpop.f32.mrf.mxu3 }
 0x1db   : > { %v1057_v15 = vadd.f32 %v2502_v40, %v1056_v42 }
 0x1dd   : > { %v1099_v43 = vmax.f32 %v1057_v15, 0.0 }
 0x1df   : > { %2049 = vmatmul.msk.f32.gmra.mxu0 %vm609_vm1, %v1099_v43 }
 0x1e2   : > { %v1059_v46 = vpop.f32.mrf.mxu3 }
 0x1e3   : > { %v1060_v48 = vadd.f32 %v2502_v40, %v1059_v46 }
 0x1e5   : > { %v1100_v49 = vmax.f32 %v1060_v48, 0.0 }
 0x1e7   : > { %2050 = vmatmul.msk.f32.gmra.mxu0 %vm609_vm1, %v1100_v49 }
 0x1ea   : > { %v1062_v20 = vpop.f32.mrf.mxu3 }
 0x1eb   : > { %v1063_v52 = vadd.f32 %v2502_v40, %v1062_v20 }
 0x1ed   : > { %v1101_v53 = vmax.f32 %v1063_v52, 0.0 }
 0x1ef   : > { %2051 = vmatmul.msk.f32.gmra.mxu0 %vm609_vm1, %v1101_v53 }
 0x1f2   : > { %v1065_v55 = vpop.f32.mrf.mxu3 }
 0x1f3   : > { %v1066_v56 = vadd.f32 %v2502_v40, %v1065_v55 }
 0x1f5   : > { %v1102_v25 = vmax.f32 %v1066_v56, 0.0 }
 0x1f7   : > { %2052 = vmatmul.msk.f32.gmra.mxu0 %vm609_vm1, %v1102_v25 }
 0x1fa   : > { %v1068_v57 = vpop.f32.mrf.mxu3 }
 0x1fb   : > { %v1069_v59 = vadd.f32 %v2502_v40, %v1068_v57 }
 0x1fd   : > { %v1103_v60 = vmax.f32 %v1069_v59, 0.0 }
 0x1ff   : > { %2053 = vmatmul.msk.f32.gmra.mxu0 %vm609_vm1, %v1103_v60 }
 0x202   : > { %v1071_v61 = vpop.f32.mrf.mxu3 }
 0x203   : > { %v1072_v44 = vadd.f32 %v2502_v40, %v1071_v61 }
 0x205   : > { %v1104_v62 = vmax.f32 %v1072_v44, 0.0 }
 0x207   : > { %2054 = vmatmul.msk.f32.gmra.mxu0 %vm609_vm1, %v1104_v62 }
 0x20a   : > { %v1074_v27 = vpop.f32.mrf.mxu3 }
 0x20b   : > { %v1075_v63 = vadd.f32 %v2502_v40, %v1074_v27 }
 0x20d   : > { %v1105_v1 = vmax.f32 %v1075_v63, 0.0 }
 0x20f   : > { %2055 = vmatmul.msk.f32.gmra.mxu0 %vm609_vm1, %v1105_v1 }
 0x212   : > { %v1077_v2 = vpop.f32.mrf.mxu3 }
 0x213   : > { %v1078_v3 = vadd.f32 %v2502_v40, %v1077_v2 }
 0x215   : > { %v1106_v5 = vmax.f32 %v1078_v3, 0.0 }
 0x217   : > { %2056 = vmatmul.msk.f32.gmra.mxu0 %vm609_vm1, %v1106_v5 }
 0x21a   : > { %v1080_v47 = vpop.f32.mrf.mxu3 }
 0x21b   : > { %v1081_v32 = vadd.f32 %v2502_v40, %v1080_v47 }
 0x21d   : > { %v1107_v6 = vmax.f32 %v1081_v32, 0.0 }
 0x21f   : > { %2057 = vmatmul.msk.f32.gmra.mxu0 %vm609_vm1, %v1107_v6 }
 0x222   : > { %v1083_v9 = vpop.f32.mrf.mxu3 }
 0x223   : > { %v1084_v37 = vadd.f32 %v2502_v40, %v1083_v9 }
 0x224   : > { %v1193_v10 = vpop.f32.mrf.mxu0 }
 0x225   : > { %v1108_v12 = vmax.f32 %v1084_v37, 0.0  ;;  %v2547_v13 = vadd.f32 %v2543_v8, %v1193_v10 }
 0x227   : > { %2058 = vmatmul.msk.f32.gmra.mxu0 %vm609_vm1, %v1108_v12  ;;  %v1250_v50 = vmul.f32 %v2547_v13, %v2547_v13 }
 0x229   : > { %v1269_v14 = vsel %vm477_vm0, %v1250_v50, 0.0 }
 0x22a   : > { %v1086_v16 = vpop.f32.mrf.mxu3  ;;  %1270 = vadd.xlane.f32.xlu0 %v1269_v14 }
 0x22b   : > { %v1087_v17 = vadd.f32 %v2502_v40, %v1086_v16 }
 0x22c   : > { %v1196_v45 = vpop.f32.mrf.mxu0 }
 0x22d   : > { %v1109_v18 = vmax.f32 %v1087_v17, 0.0  ;;  %v2555_v54 = vadd.f32 %v2543_v8, %v1196_v45 }
 0x22f   : > { %2059 = vmatmul.msk.f32.gmra.mxu0 %vm609_vm1, %v1109_v18  ;;  %v1251_v19 = vmul.f32 %v2555_v54, %v2555_v54 }
 0x231   : > { %v1272_v21 = vsel %vm477_vm0, %v1251_v19, 0.0 }
 0x232   : > { %v1089_v22 = vpop.f32.mrf.mxu3  ;;  %1273 = vadd.xlane.f32.xlu0 %v1272_v21 }
 0x233   : > { %v1090_v23 = vadd.f32 %v2502_v40, %v1089_v22 }
 0x234   : > { %v1199_v24 = vpop.f32.mrf.mxu0 }
 0x235   : > { %v1110_v58 = vmax.f32 %v1090_v23, 0.0  ;;  %v2563_v26 = vadd.f32 %v2543_v8, %v1199_v24 }
 0x237   : > { %2060 = vmatmul.msk.f32.gmra.mxu0 %vm609_vm1, %v1110_v58  ;;  %v1252_v28 = vmul.f32 %v2563_v26, %v2563_v26 }
 0x239   : > { %v1275_v29 = vsel %vm477_vm0, %v1252_v28, 0.0 }
 0x23a   : > { %1276 = vadd.xlane.f32.xlu1 %v1275_v29 }
 0x23c   : > { %v1202_v30 = vpop.f32.mrf.mxu0 }
 0x23d   : > { %v2570_v31 = vadd.f32 %v2543_v8, %v1202_v30 }
 0x23f   : > { %v1253_v40 = vmul.f32 %v2570_v31, %v2570_v31 }
 0x241   : > { %v1278_v33 = vsel %vm477_vm0, %v1253_v40, 0.0 }
 0x242   : > { %1279 = vadd.xlane.f32.xlu1 %v1278_v33 }
 0x244   : > { %v1205_v0 = vpop.f32.mrf.mxu0 }
 0x245   : > { %v2576_v34 = vadd.f32 %v2543_v8, %v1205_v0 }
 0x247   : > { %v1254_v51 = vmul.f32 %v2576_v34, %v2576_v34 }
 0x249   : > { %v1281_v35 = vsel %vm477_vm0, %v1254_v51, 0.0 }
 0x24a   : > { %1282 = vadd.xlane.f32.xlu2 %v1281_v35 }
 0x24c   : > { %v1208_v36 = vpop.f32.mrf.mxu0 }
 0x24d   : > { %v2582_v4 = vadd.f32 %v2543_v8, %v1208_v36 }
 0x24f   : > { %v1255_v38 = vmul.f32 %v2582_v4, %v2582_v4 }
 0x251   : > { %v1284_v7 = vsel %vm477_vm0, %v1255_v38, 0.0 }
 0x252   : > { %1285 = vadd.xlane.f32.xlu2 %v1284_v7 }
 0x254   : > { %v1211_v39 = vpop.f32.mrf.mxu0 }
 0x255   : > { %v2588_v41 = vadd.f32 %v2543_v8, %v1211_v39 }
 0x257   : > { %v1256_v11 = vmul.f32 %v2588_v41, %v2588_v41 }
 0x259   : > { %v1287_v42 = vsel %vm477_vm0, %v1256_v11, 0.0 }
 0x25a   : > { %1288 = vadd.xlane.f32.xlu0 %v1287_v42 }
 0x25c   : > { %v1214_v15 = vpop.f32.mrf.mxu0 }
 0x25d   : > { %v2594_v43 = vadd.f32 %v2543_v8, %v1214_v15 }
 0x25f   : > { %v1257_v46 = vmul.f32 %v2594_v43, %v2594_v43 }
 0x261   : > { %v1290_v48 = vsel %vm477_vm0, %v1257_v46, 0.0 }
 0x262   : > { %1291 = vadd.xlane.f32.xlu1 %v1290_v48 }
 0x264   : > { %v1217_v49 = vpop.f32.mrf.mxu0 }
 0x265   : > { %v2600_v20 = vadd.f32 %v2543_v8, %v1217_v49 }
 0x267   : > { %v1258_v52 = vmul.f32 %v2600_v20, %v2600_v20 }
 0x269   : > { %v1293_v53 = vsel %vm477_vm0, %v1258_v52, 0.0 }
 0x26a   : > { %1294 = vadd.xlane.f32.xlu2 %v1293_v53 }
 0x26c   : > { %v1220_v55 = vpop.f32.mrf.mxu0 }
 0x26d   : > { %v2606_v56 = vadd.f32 %v2543_v8, %v1220_v55 }
 0x26f   : > { %v1259_v25 = vmul.f32 %v2606_v56, %v2606_v56 }
 0x271   : > { %v1296_v57 = vsel %vm477_vm0, %v1259_v25, 0.0 }
 0x272   : > { %1297 = vadd.xlane.f32.xlu0 %v1296_v57 }
 0x274   : > { %v1223_v59 = vpop.f32.mrf.mxu0 }
 0x275   : > { %v2612_v60 = vadd.f32 %v2543_v8, %v1223_v59 }
 0x277   : > { %v1260_v61 = vmul.f32 %v2612_v60, %v2612_v60 }
 0x279   : > { %v1299_v44 = vsel %vm477_vm0, %v1260_v61, 0.0 }
 0x27a   : > { %1300 = vadd.xlane.f32.xlu1 %v1299_v44 }
 0x27c   : > { %v1226_v62 = vpop.f32.mrf.mxu0 }
 0x27d   : > { %v2618_v27 = vadd.f32 %v2543_v8, %v1226_v62 }
 0x27f   : > { %v1261_v63 = vmul.f32 %v2618_v27, %v2618_v27 }
 0x281   : > { %v1302_v1 = vsel %vm477_vm0, %v1261_v63, 0.0 }
 0x282   : > { %1303 = vadd.xlane.f32.xlu2 %v1302_v1 }
 0x284   : > { %v1229_v2 = vpop.f32.mrf.mxu0 }
 0x285   : > { %v2624_v3 = vadd.f32 %v2543_v8, %v1229_v2 }
 0x287   : > { %v1262_v5 = vmul.f32 %v2624_v3, %v2624_v3 }
 0x289   : > { %v1305_v47 = vsel %vm477_vm0, %v1262_v5, 0.0 }
 0x28a   : > { %1306 = vadd.xlane.f32.xlu0 %v1305_v47 }
 0x28c   : > { %v1232_v32 = vpop.f32.mrf.mxu0 }
 0x28d   : > { %v2630_v6 = vadd.f32 %v2543_v8, %v1232_v32 }
 0x28f   : > { %v1263_v9 = vmul.f32 %v2630_v6, %v2630_v6 }
 0x291   : > { %v1308_v37 = vsel %vm477_vm0, %v1263_v9, 0.0 }
 0x292   : > { %1309 = vadd.xlane.f32.xlu1 %v1308_v37 }
 0x294   : > { %v1235_v10 = vpop.f32.mrf.mxu0 }
 0x295   : > { %v2636_v12 = vadd.f32 %v2543_v8, %v1235_v10 }
 0x297   : > { %v1264_v50 = vmul.f32 %v2636_v12, %v2636_v12 }
 0x299   : > { %v1311_v14 = vsel %vm477_vm0, %v1264_v50, 0.0 }
 0x29a   : > { %1312 = vadd.xlane.f32.xlu2 %v1311_v14 }
 0x29c   : > { %v1238_v16 = vpop.f32.mrf.mxu0 }
 0x29d   : > { %v2642_v17 = vadd.f32 %v2543_v8, %v1238_v16  ;;  %v1271_v45 = vpop.xlane.xlu0 %1270 }
 0x29e   : > { %2081 = vrsqrt.f32 %v1271_v45  ;;  %vm1333_vm2 = vcmp.eq.f32.partialorder %v1271_v45, inf  ;;  %v1336_v15 = vand.u32 2147483648, %v1271_v45  ;;  %vm1335_vm3 = vcmp.eq.f32.partialorder %v1271_v45, 0.0 }
 0x29f   : > { %v1265_v18 = vmul.f32 %v2642_v17, %v2642_v17 }
 0x2a1   : > { %v1314_v19 = vsel %vm477_vm0, %v1265_v18, 0.0 }
 0x2a2   : > { %1315 = vadd.xlane.f32.xlu0 %v1314_v19 }
 0x2a4   : > { %v2082_v21 = vpop.eup %2081  ;;  %v1241_v22 = vpop.f32.mrf.mxu0 }
 0x2a5   : > { %v1327_v23 = vmul.f32 %v2082_v21, %v1271_v45  ;;  %v2648_v24 = vadd.f32 %v2543_v8, %v1241_v22  ;;  %v1274_v58 = vpop.xlane.xlu0 %1273 }
 0x2a6   : > { %2083 = vrsqrt.f32 %v1274_v58  ;;  %vm1345_vm4 = vcmp.eq.f32.partialorder %v1274_v58, inf  ;;  %v1348_v5 = vand.u32 2147483648, %v1274_v58  ;;  %vm1347_vm5 = vcmp.eq.f32.partialorder %v1274_v58, 0.0 }
 0x2a7   : > { %v1328_v28 = vmul.f32 %v2082_v21, %v1327_v23  ;;  %v1266_v29 = vmul.f32 %v2648_v24, %v2648_v24 }
 0x2a9   : > { %v1329_v30 = vmul.f32 0.5, %v1328_v28  ;;  %v1317_v40 = vsel %vm477_vm0, %v1266_v29, 0.0 }
 0x2aa   : > { %1318 = vadd.xlane.f32.xlu1 %v1317_v40 }
 0x2ab   : > { %v1330_v33 = vsub.f32 1.5, %v1329_v30 }
 0x2ac   : > { %v2084_v0 = vpop.eup %2083  ;;  %v1244_v51 = vpop.f32.mrf.mxu0 }
 0x2ad   : > { %v1331_v35 = vmul.f32 %v2082_v21, %v1330_v33  ;;  %v1339_v36 = vmul.f32 %v2084_v0, %v1274_v58  ;;  %v2654_v38 = vadd.f32 %v2543_v8, %v1244_v51  ;;  %v2656_v7 = vpop.xlane.xlu1 %1276 }
 0x2ae   : > { %2085 = vrsqrt.f32 %v2656_v7  ;;  %vm1357_vm8 = vcmp.eq.f32.partialorder %v2656_v7, inf  ;;  %v1360_v33 = vand.u32 2147483648, %v2656_v7  ;;  %vm1359_vm10 = vcmp.eq.f32.partialorder %v2656_v7, 0.0 }
 0x2af   : > { %v1332_v39 = vmul.f32 %v1331_v35, %v1271_v45  ;;  %v1340_v11 = vmul.f32 %v2084_v0, %v1339_v36  ;;  %v1267_v42 = vmul.f32 %v2654_v38, %v2654_v38 }
 0x2b1   : > { %v1334_v46 = vsel %vm1333_vm2, %v1271_v45, %v1332_v39  ;;  %v1341_v48 = vmul.f32 0.5, %v1340_v11  ;;  %v1320_v49 = vsel %vm477_vm0, %v1267_v42, 0.0 }
 0x2b2   : > { %v1337_v52 = vsel %vm1335_vm3, %v1336_v15, %v1334_v46  ;;  %1321 = vadd.xlane.f32.xlu2 %v1320_v49 }
 0x2b3   : > { %v1554_v53 = vadd.f32 1e-08, %v1337_v52  ;;  %v1342_v55 = vsub.f32 1.5, %v1341_v48 }
 0x2b4   : > { %v2086_v25 = vpop.eup %2085  ;;  %v1247_v57 = vpop.f32.mrf.mxu0 }
 0x2b5   : > { %2087 = vrcp.f32 %v1554_v53  ;;  %v2662_v59 = vpop.xlane.xlu1 %1279  ;;  %v1343_v61 = vmul.f32 %v2084_v0, %v1342_v55  ;;  %v1351_v44 = vmul.f32 %v2086_v25, %v2656_v7  ;;  %v2666_v62 = vadd.f32 %v2543_v8, %v1247_v57 }
 0x2b6   : > { %2089 = vrsqrt.f32 %v2662_v59  ;;  %v1584_v21 = vand.u32 2147483648, %v1554_v53  ;;  %v1582_v28 = vand.u32 2147483647, %v1554_v53  ;;  %vm1578_vm7 = vweird.f32 %v1554_v53 }
 0x2b7   : > { %v1344_v63 = vmul.f32 %v1343_v61, %v1274_v58  ;;  %v1352_v1 = vmul.f32 %v2086_v25, %v1351_v44  ;;  %v1268_v2 = vmul.f32 %v2666_v62, %v2666_v62  ;;  %vm1369_vm12 = vcmp.eq.f32.partialorder %v2662_v59, inf }
 0x2b8   : > { %v1585_v0 = vor.u32 1.1754944e-38, %v1584_v21  ;;  %vm1583_vm11 = vcmp.eq.f32.partialorder %v1582_v28, 8.507059e+37  ;;  %vm1371_vm14 = vcmp.eq.f32.partialorder %v2662_v59, 0.0 }
 0x2b9   : > { %v1346_v47 = vsel %vm1345_vm4, %v1274_v58, %v1344_v63  ;;  %v1353_v32 = vmul.f32 0.5, %v1352_v1  ;;  %v1323_v9 = vsel %vm477_vm0, %v1268_v2, 0.0  ;;  %v1372_v63 = vand.u32 2147483648, %v2662_v59 }
 0x2ba   : > { %v1349_v10 = vsel %vm1347_vm5, %v1348_v5, %v1346_v47  ;;  %1324 = vadd.xlane.f32.xlu0 %v1323_v9 }
 0x2bb   : > { %v2088_v37 = vpop.eup %2087  ;;  %v2672_v14 = vadd.f32 1e-08, %v1349_v10  ;;  %v1354_v16 = vsub.f32 1.5, %v1353_v32 }
 0x2bc   : > { %v2090_v50 = vpop.eup %2089  ;;  %v1574_v8 = vmul.f32 %v2088_v37, %v1554_v53  ;;  %vm1579_vm6 = vweird.f32 %v2088_v37 }
 0x2bd   : > { %v1363_v45 = vmul.f32 %v2090_v50, %v2662_v59  ;;  %v2675_v18 = vpop.xlane.xlu2 %1282  ;;  %2091 = vrcp.f32 %v2672_v14  ;;  %v1355_v22 = vmul.f32 %v2086_v25, %v1354_v16  ;;  %vm1580_vm9 = vmor %vm1578_vm7, %vm1579_vm6  ;;  %v1599_v25 = vand.u32 2147483648, %v2672_v14 }
 0x2be   : > { %v1575_v19 = vsub.f32 1.0, %v1574_v8  ;;  %2093 = vrsqrt.f32 %v2675_v18  ;;  %vm1593_vm15 = vweird.f32 %v2672_v14  ;;  %vm1381_vm4 = vcmp.eq.f32.partialorder %v2675_v18, inf }
 0x2bf   : > { %v1364_v23 = vmul.f32 %v2090_v50, %v1363_v45  ;;  %v1356_v29 = vmul.f32 %v1355_v22, %v2656_v7  ;;  %v1600_v9 = vor.u32 1.1754944e-38, %v1599_v25  ;;  %vm1383_vm5 = vcmp.eq.f32.partialorder %v2675_v18, 0.0 }
 0x2c0   : > { %v1576_v58 = vmul.f32 %v2088_v37, %v1575_v19 }
 0x2c1   : > { %v1365_v30 = vmul.f32 0.5, %v1364_v23  ;;  %v1358_v51 = vsel %vm1357_vm8, %v2656_v7, %v1356_v29 }
 0x2c2   : > { %v1577_v40 = vadd.f32 %v2088_v37, %v1576_v58  ;;  %v1361_v11 = vsel %vm1359_vm10, %v1360_v33, %v1358_v51 }
 0x2c3   : > { %v1366_v35 = vsub.f32 1.5, %v1365_v30  ;;  %v2092_v36 = vpop.eup %2091  ;;  %v1556_v48 = vadd.f32 1e-08, %v1361_v11 }
 0x2c4   : > { %v1581_v39 = vsel %vm1580_vm9, %v2088_v37, %v1577_v40  ;;  %v2094_v42 = vpop.eup %2093  ;;  %v1589_v46 = vmul.f32 %v2092_v36, %v2672_v14  ;;  %vm1594_vm13 = vweird.f32 %v2092_v36 }
 0x2c5   : > { %v1586_v15 = vsel %vm1583_vm11, %v1585_v0, %v1581_v39  ;;  %v2691_v49 = vpop.xlane.xlu2 %1285  ;;  %v1367_v52 = vmul.f32 %v2090_v50, %v1366_v35  ;;  %v1375_v53 = vmul.f32 %v2094_v42, %v2675_v18  ;;  %vm1595_vm1 = vmor %vm1593_vm15, %vm1594_vm13  ;;  %v1612_v58 = vand.u32 2147483647, %v1556_v48 }
 0x2c6   : > { %v1587_v7 = vmul.f32 %v1586_v15, %v2547_v13  ;;  %2095 = vrsqrt.f32 %v2691_v49  ;;  %v1590_v55 = vsub.f32 1.0, %v1589_v46  ;;  %v1597_v13 = vand.u32 2147483647, %v2672_v14 }
 0x2c7   : > { %2097 = vrcp.f32 %v1556_v48  ;;  %v1368_v57 = vmul.f32 %v1367_v52, %v2662_v59  ;;  %v1376_v61 = vmul.f32 %v2094_v42, %v1375_v53  ;;  %v1614_v28 = vand.u32 2147483648, %v1556_v48 }
 0x2c8   : > { %1858 = vst.msk [vmem:[%s2688_s12] sm:$0xff] %vm477_vm0, %v1587_v7  ;;  %v1591_v44 = vmul.f32 %v2092_v36, %v1590_v55  ;;  %vm1598_vm2 = vcmp.eq.f32.partialorder %v1597_v13, 8.507059e+37  ;;  %vm1608_vm6 = vweird.f32 %v1556_v48  ;;  %vm1613_vm8 = vcmp.eq.f32.partialorder %v1612_v58, 8.507059e+37 }
 0x2c9   : > { %v1370_v1 = vsel %vm1369_vm12, %v2662_v59, %v1368_v57  ;;  %v1377_v2 = vmul.f32 0.5, %v1376_v61  ;;  %vm1393_vm10 = vcmp.eq.f32.partialorder %v2691_v49, inf  ;;  %vm1395_vm11 = vcmp.eq.f32.partialorder %v2691_v49, 0.0 }
 0x2ca   : > { %v1592_v5 = vadd.f32 %v2092_v36, %v1591_v44  ;;  %v1373_v47 = vsel %vm1371_vm14, %v1372_v63, %v1370_v1  ;;  %v1396_v63 = vand.u32 2147483648, %v2691_v49 }
 0x2cb   : > { %v2706_v37 = vadd.f32 1e-08, %v1373_v47  ;;  %v1378_v10 = vsub.f32 1.5, %v1377_v2 }
 0x2cc   : > { %v2096_v32 = vpop.eup %2095  ;;  %v1596_v8 = vsel %vm1595_vm1, %v2092_v36, %v1592_v5  ;;  %v1615_v36 = vor.u32 1.1754944e-38, %v1614_v28 }
 0x2cd   : > { %v2098_v50 = vpop.eup %2097  ;;  %v1387_v16 = vmul.f32 %v2096_v32, %v2691_v49  ;;  %v2709_v45 = vpop.xlane.xlu0 %1288  ;;  %v1601_v59 = vsel %vm1598_vm2, %v1600_v9, %v1596_v8  ;;  %2099 = vrcp.f32 %v2706_v37  ;;  %v1379_v22 = vmul.f32 %v2094_v42, %v1378_v10 }
 0x2ce   : > { %v1604_v19 = vmul.f32 %v2098_v50, %v1556_v48  ;;  %v1602_v14 = vmul.f32 %v1601_v59, %v2555_v54  ;;  %2101 = vrsqrt.f32 %v2709_v45  ;;  %vm1609_vm3 = vweird.f32 %v2098_v50 }
 0x2cf   : > { %v1388_v23 = vmul.f32 %v2096_v32, %v1387_v16  ;;  %v1380_v30 = vmul.f32 %v1379_v22, %v2675_v18  ;;  %v1384_v54 = vand.u32 2147483648, %v2675_v18  ;;  %vm1610_vm7 = vmor %vm1608_vm6, %vm1609_vm3  ;;  %v1627_v25 = vand.u32 2147483647, %v2706_v37 }
 0x2d0   : > { %v1605_v21 = vsub.f32 1.0, %v1604_v19  ;;  %1859 = vst.msk [vmem:[%s2688_s12 + $0x8] sm:$0xff] %vm477_vm0, %v1602_v14  ;;  %v1629_v57 = vand.u32 2147483648, %v2706_v37  ;;  %vm1623_vm12 = vweird.f32 %v2706_v37  ;;  %vm1405_vm15 = vcmp.eq.f32.partialorder %v2709_v45, inf }
 0x2d1   : > { %v1389_v40 = vmul.f32 0.5, %v1388_v23  ;;  %v1382_v51 = vsel %vm1381_vm4, %v2675_v18, %v1380_v30  ;;  %vm1628_vm14 = vcmp.eq.f32.partialorder %v1627_v25, 8.507059e+37  ;;  %v1408_v28 = vand.u32 2147483648, %v2709_v45 }
 0x2d2   : > { %v1606_v29 = vmul.f32 %v2098_v50, %v1605_v21  ;;  %v1385_v11 = vsel %vm1383_vm5, %v1384_v54, %v1382_v51  ;;  %v1630_v47 = vor.u32 1.1754944e-38, %v1629_v57  ;;  %vm1407_vm3 = vcmp.eq.f32.partialorder %v2709_v45, 0.0 }
 0x2d3   : > { %v2100_v33 = vpop.eup %2099  ;;  %v1390_v35 = vsub.f32 1.5, %v1389_v40  ;;  %v2724_v7 = vadd.f32 1e-08, %v1385_v11 }
 0x2d4   : > { %v1607_v0 = vadd.f32 %v2098_v50, %v1606_v29  ;;  %v1619_v39 = vmul.f32 %v2100_v33, %v2706_v37  ;;  %v2102_v15 = vpop.eup %2101  ;;  %vm1624_vm9 = vweird.f32 %v2100_v33 }
 0x2d5   : > { %v2722_v42 = vpop.xlane.xlu1 %1291  ;;  %v1391_v52 = vmul.f32 %v2096_v32, %v1390_v35  ;;  %v1399_v18 = vmul.f32 %v2102_v15, %v2709_v45  ;;  %vm1625_vm13 = vmor %vm1623_vm12, %vm1624_vm9  ;;  %v1644_v23 = vand.u32 2147483648, %v2724_v7  ;;  %vm1638_vm2 = vweird.f32 %v2724_v7 }
 0x2d6   : > { %v1611_v46 = vsel %vm1610_vm7, %v2098_v50, %v1607_v0  ;;  %2103 = vrsqrt.f32 %v2722_v42  ;;  %v1620_v53 = vsub.f32 1.0, %v1619_v39  ;;  %vm1417_vm6 = vcmp.eq.f32.partialorder %v2722_v42, inf }
 0x2d7   : > { %v1616_v48 = vsel %vm1613_vm8, %v1615_v36, %v1611_v46  ;;  %2105 = vrcp.f32 %v2724_v7  ;;  %v1392_v44 = vmul.f32 %v1391_v52, %v2691_v49  ;;  %v1400_v13 = vmul.f32 %v2102_v15, %v1399_v18 }
 0x2d8   : > { %v1617_v55 = vmul.f32 %v1616_v48, %v2563_v26  ;;  %v1621_v61 = vmul.f32 %v2100_v33, %v1620_v53  ;;  %v1645_v11 = vor.u32 1.1754944e-38, %v1644_v23  ;;  %v1420_v57 = vand.u32 2147483648, %v2722_v42 }
 0x2d9   : > { %v1394_v1 = vsel %vm1393_vm10, %v2691_v49, %v1392_v44  ;;  %v1401_v2 = vmul.f32 0.5, %v1400_v13  ;;  %vm1419_vm8 = vcmp.eq.f32.partialorder %v2722_v42, 0.0 }
 0x2da   : > { %1860 = vst.msk [vmem:[%s2688_s12 + $0x10] sm:$0xff] %vm477_vm0, %v1617_v55  ;;  %v1622_v26 = vadd.f32 %v2100_v33, %v1621_v61  ;;  %v1397_v32 = vsel %vm1395_vm11, %v1396_v63, %v1394_v1 }
 0x2db   : > { %v2740_v10 = vadd.f32 1e-08, %v1397_v32  ;;  %v1402_v50 = vsub.f32 1.5, %v1401_v2 }
 0x2dc   : > { %v2104_v5 = vpop.eup %2103  ;;  %v1626_v9 = vsel %vm1625_vm13, %v2100_v33, %v1622_v26 }
 0x2dd   : > { %v1411_v8 = vmul.f32 %v2104_v5, %v2722_v42  ;;  %v2743_v16 = vpop.xlane.xlu2 %1294  ;;  %v2106_v59 = vpop.eup %2105  ;;  %v1631_v19 = vsel %vm1628_vm14, %v1630_v47, %v1626_v9  ;;  %v1403_v14 = vmul.f32 %v2102_v15, %v1402_v50  ;;  %v1659_v55 = vand.u32 2147483648, %v2740_v10 }
 0x2de   : > { %2107 = vrsqrt.f32 %v2743_v16  ;;  %v1632_v49 = vmul.f32 %v1631_v19, %v2570_v31  ;;  %v1634_v37 = vmul.f32 %v2106_v59, %v2724_v7  ;;  %vm1639_vm1 = vweird.f32 %v2106_v59 }
 0x2df   : > { %2109 = vrcp.f32 %v2740_v10  ;;  %v1412_v22 = vmul.f32 %v2104_v5, %v1411_v8  ;;  %v1404_v58 = vmul.f32 %v1403_v14, %v2709_v45  ;;  %v1642_v31 = vand.u32 2147483647, %v2724_v7  ;;  %vm1640_vm4 = vmor %vm1638_vm2, %vm1639_vm1 }
 0x2e0   : > { %1861 = vst.msk [vmem:[%s2688_s12 + $0x18] sm:$0xff] %vm477_vm0, %v1632_v49  ;;  %v1635_v21 = vsub.f32 1.0, %v1634_v37  ;;  %v1657_v44 = vand.u32 2147483647, %v2740_v10  ;;  %vm1653_vm9 = vweird.f32 %v2740_v10  ;;  %vm1429_vm12 = vcmp.eq.f32.partialorder %v2743_v16, inf }
 0x2e1   : > { %v1413_v30 = vmul.f32 0.5, %v1412_v22  ;;  %v1406_v54 = vsel %vm1405_vm15, %v2709_v45, %v1404_v58  ;;  %vm1643_vm5 = vcmp.eq.f32.partialorder %v1642_v31, 8.507059e+37  ;;  %vm1431_vm13 = vcmp.eq.f32.partialorder %v2743_v16, 0.0 }
 0x2e2   : > { %v1636_v29 = vmul.f32 %v2106_v59, %v1635_v21  ;;  %v1409_v51 = vsel %vm1407_vm3, %v1408_v28, %v1406_v54  ;;  %vm1658_vm11 = vcmp.eq.f32.partialorder %v1657_v44, 8.507059e+37  ;;  %v1432_v23 = vand.u32 2147483648, %v2743_v16 }
 0x2e3   : > { %v1414_v35 = vsub.f32 1.5, %v1413_v30  ;;  %v2763_v46 = vadd.f32 1e-08, %v1409_v51 }
 0x2e4   : > { %v2108_v40 = vpop.eup %2107  ;;  %v1637_v0 = vadd.f32 %v2106_v59, %v1636_v29 }
 0x2e5   : > { %v2110_v33 = vpop.eup %2109  ;;  %v1423_v36 = vmul.f32 %v2108_v40, %v2743_v16  ;;  %v2760_v39 = vpop.xlane.xlu0 %1297  ;;  %v1415_v45 = vmul.f32 %v2104_v5, %v1414_v35  ;;  %v1660_v5 = vor.u32 1.1754944e-38, %v1659_v55  ;;  %v1672_v21 = vand.u32 2147483647, %v2763_v46 }
 0x2e6   : > { %v1649_v15 = vmul.f32 %v2110_v33, %v2740_v10  ;;  %2111 = vrsqrt.f32 %v2760_v39  ;;  %v1641_v7 = vsel %vm1640_vm4, %v2106_v59, %v1637_v0  ;;  %vm1654_vm7 = vweird.f32 %v2110_v33 }
 0x2e7   : > { %v1424_v52 = vmul.f32 %v2108_v40, %v1423_v36  ;;  %v1646_v48 = vsel %vm1643_vm5, %v1645_v11, %v1641_v7  ;;  %2113 = vrcp.f32 %v2763_v46  ;;  %v1416_v25 = vmul.f32 %v1415_v45, %v2722_v42  ;;  %vm1655_vm10 = vmor %vm1653_vm9, %vm1654_vm7 }
 0x2e8   : > { %v1650_v53 = vsub.f32 1.0, %v1649_v15  ;;  %v1647_v18 = vmul.f32 %v1646_v48, %v2576_v34  ;;  %v1674_v22 = vand.u32 2147483648, %v2763_v46  ;;  %vm1668_vm15 = vweird.f32 %v2763_v46 }
 0x2e9   : > { %v1425_v13 = vmul.f32 0.5, %v1424_v52  ;;  %v1418_v63 = vsel %vm1417_vm6, %v2722_v42, %v1416_v25  ;;  %vm1673_vm2 = vcmp.eq.f32.partialorder %v1672_v21, 8.507059e+37  ;;  %vm1441_vm4 = vcmp.eq.f32.partialorder %v2760_v39, inf }
 0x2ea   : > { %v1651_v61 = vmul.f32 %v2110_v33, %v1650_v53  ;;  %1862 = vst.msk [vmem:[%s2688_s12 + $0x20] sm:$0xff] %vm477_vm0, %v1647_v18  ;;  %v1421_v34 = vsel %vm1419_vm8, %v1420_v57, %v1418_v63  ;;  %v1675_v35 = vor.u32 1.1754944e-38, %v1674_v22  ;;  %v1444_v55 = vand.u32 2147483648, %v2760_v39 }
 0x2eb   : > { %v1426_v2 = vsub.f32 1.5, %v1425_v13  ;;  %v2778_v47 = vadd.f32 1e-08, %v1421_v34  ;;  %vm1443_vm6 = vcmp.eq.f32.partialorder %v2760_v39, 0.0 }
 0x2ec   : > { %v2112_v26 = vpop.eup %2111  ;;  %v1652_v1 = vadd.f32 %v2110_v33, %v1651_v61 }
 0x2ed   : > { %v1435_v32 = vmul.f32 %v2112_v26, %v2760_v39  ;;  %v2781_v9 = vpop.xlane.xlu1 %1300  ;;  %v2114_v50 = vpop.eup %2113  ;;  %v1427_v59 = vmul.f32 %v2108_v40, %v1426_v2  ;;  %v1689_v45 = vand.u32 2147483648, %v2778_v47  ;;  %v1687_v53 = vand.u32 2147483647, %v2778_v47 }
 0x2ee   : > { %v1656_v8 = vsel %vm1655_vm10, %v2110_v33, %v1652_v1  ;;  %2115 = vrsqrt.f32 %v2781_v9  ;;  %v1664_v10 = vmul.f32 %v2114_v50, %v2763_v46  ;;  %vm1669_vm14 = vweird.f32 %v2114_v50 }
 0x2ef   : > { %v1661_v42 = vsel %vm1658_vm11, %v1660_v5, %v1656_v8  ;;  %2117 = vrcp.f32 %v2778_v47  ;;  %v1428_v37 = vmul.f32 %v1427_v59, %v2743_v16  ;;  %v1436_v14 = vmul.f32 %v2112_v26, %v1435_v32  ;;  %vm1670_vm1 = vmor %vm1668_vm15, %vm1669_vm14 }
 0x2f0   : > { %v1662_v19 = vmul.f32 %v1661_v42, %v2582_v4  ;;  %v1665_v49 = vsub.f32 1.0, %v1664_v10  ;;  %vm1683_vm5 = vweird.f32 %v2778_v47  ;;  %v1690_v13 = vor.u32 1.1754944e-38, %v1689_v45 }
 0x2f1   : > { %v1430_v4 = vsel %vm1429_vm12, %v2743_v16, %v1428_v37  ;;  %v1437_v28 = vmul.f32 0.5, %v1436_v14  ;;  %vm1688_vm8 = vcmp.eq.f32.partialorder %v1687_v53, 8.507059e+37  ;;  %vm1453_vm9 = vcmp.eq.f32.partialorder %v2781_v9, inf }
 0x2f2   : > { %1863 = vst.msk [vmem:[%s2688_s12 + $0x28] sm:$0xff] %vm477_vm0, %v1662_v19  ;;  %v1666_v58 = vmul.f32 %v2114_v50, %v1665_v49  ;;  %v1433_v31 = vsel %vm1431_vm13, %v1432_v23, %v1430_v4  ;;  %v1456_v14 = vand.u32 2147483648, %v2781_v9  ;;  %vm1455_vm11 = vcmp.eq.f32.partialorder %v2781_v9, 0.0 }
 0x2f3   : > { %v2797_v54 = vadd.f32 1e-08, %v1433_v31  ;;  %v1438_v33 = vsub.f32 1.5, %v1437_v28 }
 0x2f4   : > { %v2116_v29 = vpop.eup %2115  ;;  %v1667_v40 = vadd.f32 %v2114_v50, %v1666_v58 }
 0x2f5   : > { %v2118_v30 = vpop.eup %2117  ;;  %v1447_v0 = vmul.f32 %v2116_v29, %v2781_v9  ;;  %v2800_v51 = vpop.xlane.xlu2 %1303  ;;  %v1439_v46 = vmul.f32 %v2112_v26, %v1438_v33  ;;  %v1704_v42 = vand.u32 2147483648, %v2797_v54  ;;  %v1702_v37 = vand.u32 2147483647, %v2797_v54 }
 0x2f6   : > { %v1679_v36 = vmul.f32 %v2118_v30, %v2778_v47  ;;  %2119 = vrsqrt.f32 %v2800_v51  ;;  %v1671_v16 = vsel %vm1670_vm1, %v2114_v50, %v1667_v40  ;;  %vm1684_vm3 = vweird.f32 %v2118_v30 }
 0x2f7   : > { %2121 = vrcp.f32 %v2797_v54  ;;  %v1676_v11 = vsel %vm1673_vm2, %v1675_v35, %v1671_v16  ;;  %v1448_v52 = vmul.f32 %v2116_v29, %v1447_v0  ;;  %v1440_v18 = vmul.f32 %v1439_v46, %v2760_v39  ;;  %vm1685_vm7 = vmor %vm1683_vm5, %vm1684_vm3 }
 0x2f8   : > { %v1680_v15 = vsub.f32 1.0, %v1679_v36  ;;  %v1677_v7 = vmul.f32 %v1676_v11, %v2588_v41  ;;  %vm1698_vm12 = vweird.f32 %v2797_v54  ;;  %v1705_v4 = vor.u32 1.1754944e-38, %v1704_v42 }
 0x2f9   : > { %v1449_v25 = vmul.f32 0.5, %v1448_v52  ;;  %v1442_v41 = vsel %vm1441_vm4, %v2760_v39, %v1440_v18  ;;  %vm1703_vm14 = vcmp.eq.f32.partialorder %v1702_v37, 8.507059e+37  ;;  %vm1465_vm15 = vcmp.eq.f32.partialorder %v2800_v51, inf }
 0x2fa   : > { %v1681_v48 = vmul.f32 %v2118_v30, %v1680_v15  ;;  %1864 = vst.msk [vmem:[%s2688_s12 + $0x30] sm:$0xff] %vm477_vm0, %v1677_v7  ;;  %v1445_v63 = vsel %vm1443_vm6, %v1444_v55, %v1442_v41  ;;  %vm1467_vm1 = vcmp.eq.f32.partialorder %v2800_v51, 0.0  ;;  %v1468_v46 = vand.u32 2147483648, %v2800_v51 }
 0x2fb   : > { %v1450_v26 = vsub.f32 1.5, %v1449_v25  ;;  %v2820_v32 = vadd.f32 1e-08, %v1445_v63 }
 0x2fc   : > { %v2120_v57 = vpop.eup %2119  ;;  %v1682_v61 = vadd.f32 %v2118_v30, %v1681_v48 }
 0x2fd   : > { %v2122_v44 = vpop.eup %2121  ;;  %v1459_v1 = vmul.f32 %v2120_v57, %v2800_v51  ;;  %v2817_v34 = vpop.xlane.xlu0 %1306  ;;  %v1451_v50 = vmul.f32 %v2116_v29, %v1450_v26  ;;  %v1717_v11 = vand.u32 2147483647, %v2820_v32  ;;  %v1719_v15 = vand.u32 2147483648, %v2820_v32 }
 0x2fe   : > { %v1686_v2 = vsel %vm1685_vm7, %v2118_v30, %v1682_v61  ;;  %v1694_v5 = vmul.f32 %v2122_v44, %v2797_v54  ;;  %2123 = vrsqrt.f32 %v2817_v34  ;;  %vm1699_vm10 = vweird.f32 %v2122_v44 }
 0x2ff   : > { %v1691_v47 = vsel %vm1688_vm8, %v1690_v13, %v1686_v2  ;;  %v1460_v8 = vmul.f32 %v2120_v57, %v1459_v1  ;;  %2125 = vrcp.f32 %v2820_v32  ;;  %v1452_v10 = vmul.f32 %v1451_v50, %v2781_v9  ;;  %vm1700_vm13 = vmor %vm1698_vm12, %vm1699_vm10 }
 0x300   : > { %v1692_v39 = vmul.f32 %v1691_v47, %v2594_v43  ;;  %v1695_v59 = vsub.f32 1.0, %v1694_v5  ;;  %vm1713_vm3 = vweird.f32 %v2820_v32  ;;  %v1720_v41 = vor.u32 1.1754944e-38, %v1719_v15 }
 0x301   : > { %v1461_v19 = vmul.f32 0.5, %v1460_v8  ;;  %v1454_v43 = vsel %vm1453_vm9, %v2781_v9, %v1452_v10  ;;  %vm1718_vm5 = vcmp.eq.f32.partialorder %v1717_v11, 8.507059e+37  ;;  %vm1477_vm7 = vcmp.eq.f32.partialorder %v2817_v34, inf }
 0x302   : > { %1865 = vst.msk [vmem:[%s2688_s12 + $0x38] sm:$0xff] %vm477_vm0, %v1692_v39  ;;  %v1696_v49 = vmul.f32 %v2122_v44, %v1695_v59  ;;  %v1457_v23 = vsel %vm1455_vm11, %v1456_v14, %v1454_v43  ;;  %v1480_v8 = vand.u32 2147483648, %v2817_v34  ;;  %vm1479_vm9 = vcmp.eq.f32.partialorder %v2817_v34, 0.0 }
 0x303   : > { %v1462_v21 = vsub.f32 1.5, %v1461_v19  ;;  %v2835_v28 = vadd.f32 1e-08, %v1457_v23 }
 0x304   : > { %v1697_v22 = vadd.f32 %v2122_v44, %v1696_v49  ;;  %v2124_v58 = vpop.eup %2123 }
 0x305   : > { %v1463_v29 = vmul.f32 %v2120_v57, %v1462_v21  ;;  %v2837_v31 = vpop.xlane.xlu1 %1309  ;;  %v2126_v30 = vpop.eup %2125  ;;  %v1471_v33 = vmul.f32 %v2124_v58, %v2817_v34  ;;  %v1734_v2 = vand.u32 2147483648, %v2835_v28  ;;  %v1732_v47 = vand.u32 2147483647, %v2835_v28 }
 0x306   : > { %v1701_v40 = vsel %vm1700_vm13, %v2122_v44, %v1697_v22  ;;  %2127 = vrsqrt.f32 %v2837_v31  ;;  %v1709_v54 = vmul.f32 %v2126_v30, %v2820_v32  ;;  %vm1714_vm2 = vweird.f32 %v2126_v30 }
 0x307   : > { %v1706_v9 = vsel %vm1703_vm14, %v1705_v4, %v1701_v40  ;;  %2129 = vrcp.f32 %v2835_v28  ;;  %v1464_v36 = vmul.f32 %v1463_v29, %v2800_v51  ;;  %v1472_v16 = vmul.f32 %v2124_v58, %v1471_v33  ;;  %vm1715_vm4 = vmor %vm1713_vm3, %vm1714_vm2 }
 0x308   : > { %v1707_v0 = vmul.f32 %v1706_v9, %v2600_v20  ;;  %v1710_v35 = vsub.f32 1.0, %v1709_v54  ;;  %vm1728_vm8 = vweird.f32 %v2835_v28  ;;  %v1735_v19 = vor.u32 1.1754944e-38, %v1734_v2 }
 0x309   : > { %v1466_v20 = vsel %vm1465_vm15, %v2800_v51, %v1464_v36  ;;  %v1473_v45 = vmul.f32 0.5, %v1472_v16  ;;  %vm1733_vm11 = vcmp.eq.f32.partialorder %v1732_v47, 8.507059e+37  ;;  %vm1489_vm12 = vcmp.eq.f32.partialorder %v2837_v31, inf }
 0x30a   : > { %1866 = vst.msk [vmem:[%s2688_s12 + $0x40] sm:$0xff] %vm477_vm0, %v1707_v0  ;;  %v1711_v7 = vmul.f32 %v2126_v30, %v1710_v35  ;;  %v1469_v48 = vsel %vm1467_vm1, %v1468_v46, %v1466_v20  ;;  %v1492_v0 = vand.u32 2147483648, %v2837_v31  ;;  %vm1491_vm14 = vcmp.eq.f32.partialorder %v2837_v31, 0.0 }
 0x30b   : > { %v2854_v55 = vadd.f32 1e-08, %v1469_v48  ;;  %v1474_v25 = vsub.f32 1.5, %v1473_v45 }
 0x30c   : > { %v2128_v52 = vpop.eup %2127  ;;  %v1712_v18 = vadd.f32 %v2126_v30, %v1711_v7 }
 0x30d   : > { %v2130_v53 = vpop.eup %2129  ;;  %v1483_v57 = vmul.f32 %v2128_v52, %v2837_v31  ;;  %v2857_v61 = vpop.xlane.xlu2 %1312  ;;  %v1475_v26 = vmul.f32 %v2124_v58, %v1474_v25  ;;  %v1747_v54 = vand.u32 2147483647, %v2854_v55  ;;  %vm1743_vm15 = vweird.f32 %v2854_v55 }
 0x30e   : > { %v1724_v44 = vmul.f32 %v2130_v53, %v2835_v28  ;;  %2131 = vrsqrt.f32 %v2857_v61  ;;  %v1716_v51 = vsel %vm1715_vm4, %v2126_v30, %v1712_v18  ;;  %vm1729_vm6 = vweird.f32 %v2130_v53 }
 0x30f   : > { %2133 = vrcp.f32 %v2854_v55  ;;  %v1721_v13 = vsel %vm1718_vm5, %v1720_v41, %v1716_v51  ;;  %v1484_v5 = vmul.f32 %v2128_v52, %v1483_v57  ;;  %v1476_v50 = vmul.f32 %v1475_v26, %v2817_v34  ;;  %vm1730_vm10 = vmor %vm1728_vm8, %vm1729_vm6 }
 0x310   : > { %v1725_v63 = vsub.f32 1.0, %v1724_v44  ;;  %v1722_v1 = vmul.f32 %v1721_v13, %v2606_v56  ;;  %v1749_v30 = vand.u32 2147483648, %v2854_v55  ;;  %vm1748_vm2 = vcmp.eq.f32.partialorder %v1747_v54, 8.507059e+37 }
 0x311   : > { %v1485_v39 = vmul.f32 0.5, %v1484_v5  ;;  %v1478_v56 = vsel %vm1477_vm7, %v2817_v34, %v1476_v50  ;;  %vm1501_vm3 = vcmp.eq.f32.partialorder %v2857_v61, inf  ;;  %vm1503_vm4 = vcmp.eq.f32.partialorder %v2857_v61, 0.0 }
 0x312   : > { %v1726_v32 = vmul.f32 %v2130_v53, %v1725_v63  ;;  %1867 = vst.msk [vmem:[%s2688_s12 + $0x48] sm:$0xff] %vm477_vm0, %v1722_v1  ;;  %v1481_v49 = vsel %vm1479_vm9, %v1480_v8, %v1478_v56  ;;  %v1750_v15 = vor.u32 1.1754944e-38, %v1749_v30  ;;  %v1504_v51 = vand.u32 2147483648, %v2857_v61 }
 0x313   : > { %v1486_v37 = vsub.f32 1.5, %v1485_v39  ;;  %v2877_v23 = vadd.f32 1e-08, %v1481_v49 }
 0x314   : > { %v2132_v59 = vpop.eup %2131  ;;  %v1727_v42 = vadd.f32 %v2130_v53, %v1726_v32 }
 0x315   : > { %v2134_v10 = vpop.eup %2133  ;;  %v1495_v14 = vmul.f32 %v2132_v59, %v2857_v61  ;;  %v2874_v43 = vpop.xlane.xlu0 %1315  ;;  %v1487_v4 = vmul.f32 %v2128_v52, %v1486_v37  ;;  %v1762_v41 = vand.u32 2147483647, %v2877_v23  ;;  %v1764_v44 = vand.u32 2147483648, %v2877_v23 }
 0x316   : > { %v1731_v21 = vsel %vm1730_vm10, %v2130_v53, %v1727_v42  ;;  %v1739_v22 = vmul.f32 %v2134_v10, %v2854_v55  ;;  %2135 = vrsqrt.f32 %v2874_v43  ;;  %vm1744_vm13 = vweird.f32 %v2134_v10 }
 0x317   : > { %v1736_v58 = vsel %vm1733_vm11, %v1735_v19, %v1731_v21  ;;  %v1496_v28 = vmul.f32 %v2132_v59, %v1495_v14  ;;  %2137 = vrcp.f32 %v2877_v23  ;;  %v1488_v40 = vmul.f32 %v1487_v4, %v2837_v31  ;;  %vm1745_vm1 = vmor %vm1743_vm15, %vm1744_vm13 }
 0x318   : > { %v1737_v34 = vmul.f32 %v1736_v58, %v2612_v60  ;;  %v1740_v29 = vsub.f32 1.0, %v1739_v22  ;;  %vm1758_vm6 = vweird.f32 %v2877_v23  ;;  %v1765_v39 = vor.u32 1.1754944e-38, %v1764_v44 }
 0x319   : > { %v1497_v33 = vmul.f32 0.5, %v1496_v28  ;;  %v1490_v60 = vsel %vm1489_vm12, %v2837_v31, %v1488_v40  ;;  %vm1763_vm8 = vcmp.eq.f32.partialorder %v1762_v41, 8.507059e+37  ;;  %vm1513_vm10 = vcmp.eq.f32.partialorder %v2874_v43, inf }
 0x31a   : > { %1868 = vst.msk [vmem:[%s2688_s12 + $0x50] sm:$0xff] %vm477_vm0, %v1737_v34  ;;  %v1741_v9 = vmul.f32 %v2134_v10, %v1740_v29  ;;  %v1493_v16 = vsel %vm1491_vm14, %v1492_v0, %v1490_v60  ;;  %vm1515_vm12 = vcmp.eq.f32.partialorder %v2874_v43, 0.0 }
 0x31b   : > { %v1498_v35 = vsub.f32 1.5, %v1497_v33  ;;  %v2892_v46 = vadd.f32 1e-08, %v1493_v16 }
 0x31c   : > { %v1742_v36 = vadd.f32 %v2134_v10, %v1741_v9  ;;  %v2136_v11 = vpop.eup %2135 }
 0x31d   : > { %v1499_v7 = vmul.f32 %v2132_v59, %v1498_v35  ;;  %v2894_v20 = vpop.xlane.xlu1 %1318  ;;  %v2138_v45 = vpop.eup %2137  ;;  %v1507_v48 = vmul.f32 %v2136_v11, %v2874_v43  ;;  %v1779_v49 = vand.u32 2147483648, %v2892_v46  ;;  %v1777_v21 = vand.u32 2147483647, %v2892_v46 }
 0x31e   : > { %v1746_v52 = vsel %vm1745_vm1, %v2134_v10, %v1742_v36  ;;  %2139 = vrsqrt.f32 %v2894_v20  ;;  %v1754_v53 = vmul.f32 %v2138_v45, %v2877_v23  ;;  %vm1759_vm5 = vweird.f32 %v2138_v45 }
 0x31f   : > { %v1751_v31 = vsel %vm1748_vm2, %v1750_v15, %v1746_v52  ;;  %2141 = vrcp.f32 %v2892_v46  ;;  %v1500_v25 = vmul.f32 %v1499_v7, %v2857_v61  ;;  %v1508_v57 = vmul.f32 %v2136_v11, %v1507_v48  ;;  %vm1760_vm7 = vmor %vm1758_vm6, %vm1759_vm5 }
 0x320   : > { %v1752_v18 = vmul.f32 %v1751_v31, %v2618_v27  ;;  %v1755_v55 = vsub.f32 1.0, %v1754_v53  ;;  %v1516_v23 = vand.u32 2147483648, %v2874_v43  ;;  %vm1773_vm11 = vweird.f32 %v2892_v46 }
 0x321   : > { %v1502_v27 = vsel %vm1501_vm3, %v2857_v61, %v1500_v25  ;;  %v1509_v63 = vmul.f32 0.5, %v1508_v57  ;;  %v1780_v29 = vor.u32 1.1754944e-38, %v1779_v49  ;;  %vm1778_vm14 = vcmp.eq.f32.partialorder %v1777_v21, 8.507059e+37 }
 0x322   : > { %1869 = vst.msk [vmem:[%s2688_s12 + $0x58] sm:$0xff] %vm477_vm0, %v1752_v18  ;;  %v1756_v13 = vmul.f32 %v2138_v45, %v1755_v55  ;;  %v1505_v1 = vsel %vm1503_vm4, %v1504_v51, %v1502_v27  ;;  %vm1525_vm15 = vcmp.eq.f32.partialorder %v2894_v20, inf  ;;  %v1528_v48 = vand.u32 2147483648, %v2894_v20 }
 0x323   : > { %v2911_v32 = vadd.f32 1e-08, %v1505_v1  ;;  %v1510_v47 = vsub.f32 1.5, %v1509_v63  ;;  %vm1527_vm2 = vcmp.eq.f32.partialorder %v2894_v20, 0.0 }
 0x324   : > { %v2140_v26 = vpop.eup %2139  ;;  %v1757_v5 = vadd.f32 %v2138_v45, %v1756_v13 }
 0x325   : > { %v2142_v2 = vpop.eup %2141  ;;  %v1519_v50 = vmul.f32 %v2140_v26, %v2894_v20  ;;  %v2914_v8 = vpop.xlane.xlu2 %1321  ;;  %v1511_v10 = vmul.f32 %v2136_v11, %v1510_v47  ;;  %v1794_v15 = vand.u32 2147483648, %v2911_v32  ;;  %v1792_v52 = vand.u32 2147483647, %v2911_v32 }
 0x326   : > { %v1769_v59 = vmul.f32 %v2142_v2, %v2892_v46  ;;  %2143 = vrsqrt.f32 %v2914_v8  ;;  %v1761_v61 = vsel %vm1760_vm7, %v2138_v45, %v1757_v5  ;;  %vm1774_vm9 = vweird.f32 %v2142_v2 }
 0x327   : > { %2145 = vrcp.f32 %v2911_v32  ;;  %v1766_v42 = vsel %vm1763_vm8, %v1765_v39, %v1761_v61  ;;  %v1520_v37 = vmul.f32 %v2140_v26, %v1519_v50  ;;  %v1512_v22 = vmul.f32 %v1511_v10, %v2874_v43  ;;  %vm1775_vm13 = vmor %vm1773_vm11, %vm1774_vm9 }
 0x328   : > { %v1770_v56 = vsub.f32 1.0, %v1769_v59  ;;  %v1767_v19 = vmul.f32 %v1766_v42, %v2624_v3  ;;  %vm1788_vm3 = vweird.f32 %v2911_v32  ;;  %v1795_v25 = vor.u32 1.1754944e-38, %v1794_v15 }
 0x329   : > { %v1521_v58 = vmul.f32 0.5, %v1520_v37  ;;  %v1514_v3 = vsel %vm1513_vm10, %v2874_v43, %v1512_v22  ;;  %vm1793_vm5 = vcmp.eq.f32.partialorder %v1792_v52, 8.507059e+37  ;;  %vm1537_vm6 = vcmp.eq.f32.partialorder %v2914_v8, inf }
 0x32a   : > { %v1771_v14 = vmul.f32 %v2142_v2, %v1770_v56  ;;  %1870 = vst.msk [vmem:[%s2688_s12 + $0x60] sm:$0xff] %vm477_vm0, %v1767_v19  ;;  %v1517_v30 = vsel %vm1515_vm12, %v1516_v23, %v1514_v3  ;;  %vm1539_vm7 = vcmp.eq.f32.partialorder %v2914_v8, 0.0  ;;  %v1540_v47 = vand.u32 2147483648, %v2914_v8 }
 0x32b   : > { %v1522_v40 = vsub.f32 1.5, %v1521_v58  ;;  %v1569_v0 = vadd.f32 1e-08, %v1517_v30 }
 0x32c   : > { %v2144_v4 = vpop.eup %2143  ;;  %v1772_v28 = vadd.f32 %v2142_v2, %v1771_v14 }
 0x32d   : > { %v2146_v34 = vpop.eup %2145  ;;  %v1531_v33 = vmul.f32 %v2144_v4, %v2914_v8  ;;  %v2932_v60 = vpop.xlane.xlu0 %1324  ;;  %v1523_v36 = vmul.f32 %v2140_v26, %v1522_v40  ;;  %v1807_v5 = vand.u32 2147483647, %v1569_v0  ;;  %vm1803_vm9 = vweird.f32 %v1569_v0 }
 0x32e   : > { %v1776_v9 = vsel %vm1775_vm13, %v2142_v2, %v1772_v28  ;;  %v1784_v54 = vmul.f32 %v2146_v34, %v2911_v32  ;;  %2147 = vrsqrt.f32 %v2932_v60  ;;  %vm1789_vm1 = vweird.f32 %v2146_v34 }
 0x32f   : > { %v1781_v35 = vsel %vm1778_vm14, %v1780_v29, %v1776_v9  ;;  %v1532_v16 = vmul.f32 %v2144_v4, %v1531_v33  ;;  %2149 = vrcp.f32 %v1569_v0  ;;  %v1524_v46 = vmul.f32 %v1523_v36, %v2894_v20  ;;  %vm1790_vm4 = vmor %vm1788_vm3, %vm1789_vm1 }
 0x330   : > { %v1782_v43 = vmul.f32 %v1781_v35, %v2630_v6  ;;  %v1785_v11 = vsub.f32 1.0, %v1784_v54  ;;  %v1809_v32 = vand.u32 2147483648, %v1569_v0  ;;  %vm1808_vm11 = vcmp.eq.f32.partialorder %v1807_v5, 8.507059e+37 }
 0x331   : > { %v1533_v7 = vmul.f32 0.5, %v1532_v16  ;;  %v1526_v31 = vsel %vm1525_vm15, %v2894_v20, %v1524_v46  ;;  %vm1549_vm13 = vcmp.eq.f32.partialorder %v2932_v60, inf  ;;  %v1552_v3 = vand.u32 2147483648, %v2932_v60 }
 0x332   : > { %1871 = vst.msk [vmem:[%s2688_s12 + $0x68] sm:$0xff] %vm477_vm0, %v1782_v43  ;;  %v1786_v45 = vmul.f32 %v2146_v34, %v1785_v11  ;;  %v1529_v18 = vsel %vm1527_vm2, %v1528_v48, %v1526_v31  ;;  %v1810_v19 = vor.u32 1.1754944e-38, %v1809_v32  ;;  %vm1551_vm15 = vcmp.eq.f32.partialorder %v2932_v60, 0.0 }
 0x333   : > { %v1534_v6 = vsub.f32 1.5, %v1533_v7  ;;  %v1570_v57 = vadd.f32 1e-08, %v1529_v18 }
 0x334   : > { %v1787_v53 = vadd.f32 %v2146_v34, %v1786_v45  ;;  %v2148_v55 = vpop.eup %2147 }
 0x335   : > { %v1535_v41 = vmul.f32 %v2144_v4, %v1534_v6  ;;  %v2150_v44 = vpop.eup %2149  ;;  %v1543_v13 = vmul.f32 %v2148_v55, %v2932_v60  ;;  %2151 = vrcp.f32 %v1570_v57  ;;  %v1822_v4 = vand.u32 2147483647, %v1570_v57 }
 0x336   : > { %v1791_v51 = vsel %vm1790_vm4, %v2146_v34, %v1787_v53  ;;  %v1799_v63 = vmul.f32 %v2150_v44, %v1569_v0  ;;  %vm1804_vm8 = vweird.f32 %v2150_v44  ;;  %vm1818_vm14 = vweird.f32 %v1570_v57 }
 0x337   : > { %v1796_v27 = vsel %vm1793_vm5, %v1795_v25, %v1791_v51  ;;  %v1536_v1 = vmul.f32 %v1535_v41, %v2914_v8  ;;  %v1544_v2 = vmul.f32 %v2148_v55, %v1543_v13  ;;  %vm1805_vm10 = vmor %vm1803_vm9, %vm1804_vm8  ;;  %vm1823_vm2 = vcmp.eq.f32.partialorder %v1822_v4, 8.507059e+37 }
 0x338   : > { %v1797_v20 = vmul.f32 %v1796_v27, %v2636_v12  ;;  %v1800_v26 = vsub.f32 1.0, %v1799_v63 }
 0x339   : > { %v1538_v39 = vsel %vm1537_vm6, %v2914_v8, %v1536_v1  ;;  %v1545_v59 = vmul.f32 0.5, %v1544_v2  ;;  %v1824_v8 = vand.u32 2147483648, %v1570_v57 }
 0x33a   : > { %1872 = vst.msk [vmem:[%s2688_s12 + $0x70] sm:$0xff] %vm477_vm0, %v1797_v20  ;;  %v1801_v50 = vmul.f32 %v2150_v44, %v1800_v26  ;;  %v1541_v12 = vsel %vm1539_vm7, %v1540_v47, %v1538_v39 }
 0x33b   : > { %v2152_v61 = vpop.eup %2151  ;;  %v1571_v56 = vadd.f32 1e-08, %v1541_v12  ;;  %v1546_v10 = vsub.f32 1.5, %v1545_v59  ;;  %v1825_v30 = vor.u32 1.1754944e-38, %v1824_v8 }
 0x33c   : > { %v1802_v42 = vadd.f32 %v2150_v44, %v1801_v50  ;;  %v1814_v49 = vmul.f32 %v2152_v61, %v1570_v57  ;;  %vm1819_vm12 = vweird.f32 %v2152_v61 }
 0x33d   : > { %2153 = vrcp.f32 %v1571_v56  ;;  %v1547_v22 = vmul.f32 %v2148_v55, %v1546_v10  ;;  %vm1820_vm1 = vmor %vm1818_vm14, %vm1819_vm12  ;;  %v1839_v16 = vand.u32 2147483648, %v1571_v56  ;;  %vm1833_vm4 = vweird.f32 %v1571_v56 }
 0x33e   : > { %v1806_v37 = vsel %vm1805_vm10, %v2150_v44, %v1802_v42  ;;  %v1815_v21 = vsub.f32 1.0, %v1814_v49 }
 0x33f   : > { %v1811_v14 = vsel %vm1808_vm11, %v1810_v19, %v1806_v37  ;;  %v1548_v28 = vmul.f32 %v1547_v22, %v2932_v60  ;;  %v1840_v15 = vor.u32 1.1754944e-38, %v1839_v16 }
 0x340   : > { %v1812_v23 = vmul.f32 %v1811_v14, %v2642_v17  ;;  %v1816_v58 = vmul.f32 %v2152_v61, %v1815_v21 }
 0x341   : > { %v1550_v29 = vsel %vm1549_vm13, %v2932_v60, %v1548_v28  ;;  %v1837_v60 = vand.u32 2147483647, %v1571_v56 }
 0x342   : > { %1873 = vst.msk [vmem:[%s2688_s12 + $0x78] sm:$0xff] %vm477_vm0, %v1812_v23  ;;  %v1817_v34 = vadd.f32 %v2152_v61, %v1816_v58  ;;  %v1553_v40 = vsel %vm1551_vm15, %v1552_v3, %v1550_v29 }
 0x343   : > { %v2154_v17 = vpop.eup %2153  ;;  %v1572_v54 = vadd.f32 1e-08, %v1553_v40  ;;  %vm1838_vm6 = vcmp.eq.f32.partialorder %v1837_v60, 8.507059e+37 }
 0x344   : > { %v1821_v33 = vsel %vm1820_vm1, %v2152_v61, %v1817_v34  ;;  %v1829_v9 = vmul.f32 %v2154_v17, %v1571_v56  ;;  %vm1834_vm3 = vweird.f32 %v2154_v17 }
 0x345   : > { %v1826_v0 = vsel %vm1823_vm2, %v1825_v30, %v1821_v33  ;;  %2155 = vrcp.f32 %v1572_v54  ;;  %vm1835_vm5 = vmor %vm1833_vm4, %vm1834_vm3  ;;  %v1854_v31 = vand.u32 2147483648, %v1572_v54  ;;  %v1852_v53 = vand.u32 2147483647, %v1572_v54 }
 0x346   : > { %v1827_v35 = vmul.f32 %v1826_v0, %v2648_v24  ;;  %v1830_v36 = vsub.f32 1.0, %v1829_v9  ;;  %vm1848_vm8 = vweird.f32 %v1572_v54 }
 0x347   : > { %v1855_v55 = vor.u32 1.1754944e-38, %v1854_v31  ;;  %vm1853_vm10 = vcmp.eq.f32.partialorder %v1852_v53, 8.507059e+37 }
 0x348   : > { %1874 = vst.msk [vmem:[%s2688_s12 + $0x80] sm:$0xff] %vm477_vm0, %v1827_v35  ;;  %v1831_v43 = vmul.f32 %v2154_v17, %v1830_v36 }
 0x34a   : > { %v1832_v11 = vadd.f32 %v2154_v17, %v1831_v43 }
 0x34b   : > { %v2156_v46 = vpop.eup %2155 }
 0x34c   : > { %v1836_v7 = vsel %vm1835_vm5, %v2154_v17, %v1832_v11  ;;  %v1844_v52 = vmul.f32 %v2156_v46, %v1572_v54  ;;  %vm1849_vm7 = vweird.f32 %v2156_v46 }
 0x34d   : > { %v1841_v45 = vsel %vm1838_vm6, %v1840_v15, %v1836_v7  ;;  %vm1850_vm9 = vmor %vm1848_vm8, %vm1849_vm7 }
 0x34e   : > { %v1842_v24 = vmul.f32 %v1841_v45, %v2654_v38  ;;  %v1845_v48 = vsub.f32 1.0, %v1844_v52 }
 0x350   : > { %1875 = vst.msk [vmem:[%s2688_s12 + $0x88] sm:$0xff] %vm477_vm0, %v1842_v24  ;;  %v1846_v6 = vmul.f32 %v2156_v46, %v1845_v48 }
 0x352   : > { %v1847_v18 = vadd.f32 %v2156_v46, %v1846_v6 }
 0x354   : > { %v1851_v25 = vsel %vm1850_vm9, %v2156_v46, %v1847_v18 }
 0x355   : > { %v1856_v57 = vsel %vm1853_vm10, %v1855_v55, %v1851_v25 }
 0x356   : > { %v1857_v41 = vmul.f32 %v1856_v57, %v2666_v62 }
 0x358   : > { %1876 = vst.msk [vmem:[%s2688_s12 + $0x90] sm:$0xff] %vm477_vm0, %v1857_v41 }
 0x359 PF: > { %s21_s17 = sadd.s32 1, %s2163_s17  }
 0x35a   : > { %p18_p4 = scmp.ge.s32.totalorder %s21_s17, 4  }
 0x35c   :  { %20 = sbr.rel (!%p18_p4) target bundleno = 1 (0x1), region = 100 }

</bundles_post_ra>
